<compile_context>
chip_gen: v5e
topology: v5e:2x2
jax: 0.10.0
libtpu: 0.0.40
codegen_flags: <defaults>
</compile_context>

<pallas_src>
import functools
import numpy as np
import jax
import jax.numpy as jnp
from jax.experimental import pallas as pl
from jax.experimental.pallas import tpu as pltpu

NEG = -1e9  # large finite negative instead of -inf (avoids NaN in softmax)


def _round8(n):
    return ((n + 7) // 8) * 8


def _create_mask_np(window_size, displacement, mask_flag):
    m = np.zeros((window_size, window_size), dtype=np.float32)
    if not mask_flag:
        m[-displacement * window_size:, :-displacement * window_size] = NEG
        m[:-displacement * window_size, -displacement * window_size:] = NEG
    else:
        m[-displacement:, :-displacement] = NEG
        m[:-displacement, -displacement:] = NEG
    return m


# ------------------------------ host-side parameter folding ------------------------------

def fold_params(params, *, batch, num_patches, dim, heads, head_dim, window_size,
                shifted, relative_pos_embedding, wa, mask_flag=True):
    """Folds the cyclic shift, window rearrangement, rel-pos bias/masks and the batch
    block-diagonal structure into ONE packed f32 slab (single prologue DMA) + static layout."""
    p, f = num_patches, dim
    inner = heads * head_dim
    ws = min(window_size, p)          # forward-time clamp (same as the torch module)
    assert p % ws == 0
    new_p = p // ws
    disp = ws // 2
    bp = batch * p

    # shift permutation: xs[r] = xn[sigma(r)], sigma(r) = (r + disp) % p
    sigma = (np.arange(p) + disp) % p if shifted else np.arange(p)
    S = np.zeros((p, p), np.float32)
    S[np.arange(p), sigma] = 1.0

    # window re-arrangement + reverse shift (same construction as the validated original)
    pmid = (np.arange(p) - disp) % p if shifted else np.arange(p)
    w_, i_ = pmid // ws, pmid % ws
    U = np.zeros((p, p), np.float32)
    U[np.arange(p), i_ * new_p + w_] = 1.0

    # per-window (ws, ws) bias: relative position embedding (+ shifted-window mask)
    rel_idx = (np.arange(ws)[None, :] - np.arange(ws)[:, None]) + ws - 1
    pos = np.asarray(params["pos_embedding"], np.float32)
    bias2d = pos[rel_idx] if relative_pos_embedding else pos
    if shifted:
        bias2d = bias2d + _create_mask_np(ws, disp, mask_flag)

    # full (p, p) bias in shifted-sequence space; cross-window pairs suppressed with NEG
    ii = np.arange(p) // new_p        # position inside window
    ww = np.arange(p) % new_p         # window index
    same = ww[:, None] == ww[None, :]
    B_shift = np.where(same, bias2d[ii[:, None], ii[None, :]], NEG).astype(np.float32)

    # fold the cyclic shift OUT of the kernel (exact permutation algebra)
    B_tok = S.T @ B_shift @ S                                    # bias in un-shifted order
    M_final = U @ S                                              # rearrange+unshift o shift
    W_wa_f = S.T @ np.asarray(params["w_wa"], np.float32) @ S
    b_wa_f = S.T @ np.asarray(params["b_wa"], np.float32)

    # batch fusion: block-diagonal over batch; cross-batch attention masked with NEG
    def blockdiag(m, fill):
        out = np.full((bp, bp), fill, np.float32)
        for b in range(batch):
            out[b * p:(b + 1) * p, b * p:(b + 1) * p] = m
        return out

    W_wa_bd = blockdiag(W_wa_f, 0.0)
    B_bd = blockdiag(B_tok, NEG)
    M_bd = blockdiag(M_final, 0.0)
    b_wa_bd = np.tile(b_wa_f, batch)

    # ---- pack everything into one f32 slab; every region starts at an 8-aligned row ----
    width = max(bp, 3 * inner, f)
    row_wwa = 0
    row_qkv = row_wwa + _round8(bp)
    row_wout = row_qkv + _round8(f)
    row_mfin = row_wout + _round8(inner)
    row_bwa = row_mfin + _round8(bp)
    row_gamma = row_bwa + _round8(bp)
    row_beta = row_gamma + 8
    row_bout = row_beta + 8
    row_bias = row_bout + 8
    rows = row_bias + _round8(heads * bp)

    slab = np.zeros((rows, width), np.float32)
    slab[row_wwa:row_wwa + bp, :bp] = W_wa_bd
    slab[row_qkv:row_qkv + f, :3 * inner] = np.asarray(params["w_qkv_t"], np.float32)
    slab[row_wout:row_wout + inner, :f] = np.asarray(params["w_out_t"], np.float32)
    slab[row_mfin:row_mfin + bp, :bp] = M_bd
    slab[row_bwa:row_bwa + bp, 0] = b_wa_bd
    slab[row_gamma, :f] = np.asarray(params["gamma"], np.float32)
    slab[row_beta, :f] = np.asarray(params["beta"], np.float32)
    slab[row_bout, :f] = np.asarray(params["b_out"], np.float32)
    slab[row_bias:row_bias + heads * bp, :bp] = np.tile(B_bd, (heads, 1))

    layout = dict(bp=bp, f=f, inner=inner, heads=heads, head_dim=head_dim, wa=wa,
                  row_wwa=row_wwa, row_qkv=row_qkv, row_wout=row_wout, row_mfin=row_mfin,
                  row_bwa=row_bwa, row_gamma=row_gamma, row_beta=row_beta,
                  row_bout=row_bout, row_bias=row_bias)
    return jnp.asarray(slab), layout


# ------------------------------ fused Pallas kernel ------------------------------

def _prenorm_wattn_kernel(x_ref, slab_ref, o_ref, *, layout, scale, eps):
    f32 = jnp.float32
    bp, f, inner = layout["bp"], layout["f"], layout["inner"]
    heads, hd = layout["heads"], layout["head_dim"]

    x = x_ref[...]                                                # (B*P, F), all batches fused

    gamma = slab_ref[layout["row_gamma"]:layout["row_gamma"] + 1, :f]   # (1, F)
    beta = slab_ref[layout["row_beta"]:layout["row_beta"] + 1, :f]
    b_out = slab_ref[layout["row_bout"]:layout["row_bout"] + 1, :f]

    # ---- PreNorm: LayerNorm over the feature dim (VPU + EUP rsqrt) ----
    mu = jnp.mean(x, axis=-1, keepdims=True)
    xc = x - mu
    var = jnp.mean(xc * xc, axis=-1, keepdims=True)
    xn = xc * jax.lax.rsqrt(var + eps) * gamma + beta

    # ---- wa gating (cyclic shift already folded into W_wa / b_wa on the host) ----
    if layout["wa"]:
        m = jnp.mean(xn, axis=-1, keepdims=True)                  # (B*P, 1)
        w_wa = slab_ref[layout["row_wwa"]:layout["row_wwa"] + bp, :bp]
        b_wa = slab_ref[layout["row_bwa"]:layout["row_bwa"] + bp, 0:1]
        gate = jnp.maximum(jnp.dot(w_wa, m, preferred_element_type=f32) + b_wa, 0.0)
        xn = xn * gate

    # ---- qkv projection (bias-free); softmax scale folded into q ----
    w_qkv = slab_ref[layout["row_qkv"]:layout["row_qkv"] + f, :3 * inner]
    qkv = jnp.dot(xn, w_qkv, preferred_element_type=f32)          # (B*P, 3*inner)
    q = qkv[:, :inner] * scale
    k = qkv[:, inner:2 * inner]
    v = qkv[:, 2 * inner:]

    # ---- one softmax for all heads / windows / batches: per-head score blocks stacked
    #      along sublanes; cross-window and cross-batch pairs carry -1e9 in the bias ----
    scores = [
        jax.lax.dot_general(q[:, h * hd:(h + 1) * hd], k[:, h * hd:(h + 1) * hd],
                            (((1,), (1,)), ((), ())), preferred_element_type=f32)
        for h in range(heads)                                     # static unroll (heads=4)
    ]
    bias = slab_ref[layout["row_bias"]:layout["row_bias"] + heads * bp, :bp]
    s = jnp.concatenate(scores, axis=0) + bias                    # (heads*B*P, B*P)
    s = s - jnp.max(s, axis=-1, keepdims=True)
    e = jnp.exp(s)
    p_attn = e / jnp.sum(e, axis=-1, keepdims=True)               # exact divide (review fix)

    # ---- per-head PV; output projection accumulated directly (no concat / relayout) ----
    w_out = slab_ref[layout["row_wout"]:layout["row_wout"] + inner, :f]
    y = jnp.zeros((bp, f), dtype=f32)
    for h in range(heads):
        o_h = jnp.dot(p_attn[h * bp:(h + 1) * bp, :], v[:, h * hd:(h + 1) * hd],
                      preferred_element_type=f32)                 # (B*P, hd)
        y = y + jnp.dot(o_h, w_out[h * hd:(h + 1) * hd, :], preferred_element_type=f32)

    # ---- window re-arrange + reverse shift folded into one exact permutation matmul ----
    m_fin = slab_ref[layout["row_mfin"]:layout["row_mfin"] + bp, :bp]
    y = jnp.dot(m_fin, y, preferred_element_type=f32) + b_out
    o_ref[...] = y.astype(o_ref.dtype)


def prenorm_window_attention(x, slab, *, layout, eps=1e-5):
    b, p, f = x.shape
    bp = layout["bp"]
    assert bp == b * p and f == layout["f"]
    rows, width = slab.shape
    scale = layout["head_dim"] ** (-0.5)
    kern = functools.partial(_prenorm_wattn_kernel, layout=layout, scale=scale, eps=eps)
    out = pl.pallas_call(
        kern,
        out_shape=jax.ShapeDtypeStruct((bp, f), jnp.float32),
        grid=(1,),
        in_specs=[
            pl.BlockSpec((bp, f), lambda i: (0, 0)),              # fused (B*P, F) tokens
            pl.BlockSpec((rows, width), lambda i: (0, 0)),        # packed parameter slab
        ],
        out_specs=pl.BlockSpec((bp, f), lambda i: (0, 0)),
        compiler_params=pltpu.CompilerParams(dimension_semantics=("arbitrary",)),
    )(x.reshape(bp, f), slab)
    return out.reshape(b, p, f)


# ------------------------------ pure-JAX reference ------------------------------

def reference_forward(x, params, *, heads, head_dim, window_size, shifted,
                      relative_pos_embedding, wa, mask_flag=True, eps=1e-5):
    b, p, f = x.shape
    inner = heads * head_dim
    ws = min(window_size, p)
    new_p = p // ws
    disp = ws // 2
    scale = head_dim ** (-0.5)

    mu = jnp.mean(x, axis=-1, keepdims=True)
    var = jnp.mean((x - mu) ** 2, axis=-1, keepdims=True)
    x = (x - mu) / jnp.sqrt(var + eps) * params["gamma"] + params["beta"]

    if shifted:
        x = jnp.roll(x, -disp, axis=1)
    if wa:
        m = jnp.mean(x, axis=2)
        y = jax.nn.relu(m @ params["w_wa"].T + params["b_wa"])
        x = x * y[:, :, None]
    qkv = x @ params["w_qkv_t"]
    q, k, v = jnp.split(qkv, 3, axis=-1)

    def to_w(t):
        t = t.reshape(b, ws, new_p, heads, head_dim)
        return jnp.transpose(t, (0, 3, 2, 1, 4))

    q, k, v = map(to_w, (q, k, v))
    dots = jnp.einsum('bhwid,bhwjd->bhwij', q, k) * scale
    rel_idx = (np.arange(ws)[None, :] - np.arange(ws)[:, None]) + ws - 1
    if relative_pos_embedding:
        dots = dots + params["pos_embedding"][jnp.asarray(rel_idx)]
    else:
        dots = dots + params["pos_embedding"]
    if shifted:
        dots = dots + jnp.asarray(_create_mask_np(ws, disp, mask_flag))
    attn = jax.nn.softmax(dots, axis=-1)
    out = jnp.einsum('bhwij,bhwjd->bhwid', attn, v)
    out = jnp.transpose(out, (0, 2, 3, 1, 4)).reshape(b, p, inner)
    out = out @ params["w_out_t"] + params["b_out"]
    if shifted:
        out = jnp.roll(out, disp, axis=1)
    return out


# ------------------------------ main ------------------------------

if __name__ == "__main__":
    B, P, DIM = 2, 16, 32
    HEADS, HEAD_DIM, WS = 4, 8, 4
    INNER = HEADS * HEAD_DIM

    key = jax.random.PRNGKey(0)
    ks = jax.random.split(key, 9)
    x = jax.random.normal(ks[0], (B, P, DIM), dtype=jnp.float32)

    # Parameter shapes follow the torch modules' __init__ (wa_dim == num patches == 16).
    w_qkv = jax.random.normal(ks[1], (3 * INNER, DIM), dtype=jnp.float32) * 0.2
    w_out = jax.random.normal(ks[2], (DIM, INNER), dtype=jnp.float32) * 0.2
    b_out = jax.random.normal(ks[3], (DIM,), dtype=jnp.float32) * 0.2
    w_wa = jax.random.normal(ks[4], (P, P), dtype=jnp.float32) * 0.2
    b_wa = jax.random.normal(ks[5], (P,), dtype=jnp.float32) * 0.2
    pos_embedding = jax.random.normal(ks[6], (2 * WS - 1,), dtype=jnp.float32)
    gamma = 1.0 + 0.1 * jax.random.normal(ks[7], (DIM,), dtype=jnp.float32)
    beta = 0.1 * jax.random.normal(ks[8], (DIM,), dtype=jnp.float32)

    params = {
        "w_qkv_t": w_qkv.T,      # (DIM, 3*INNER) for x @ W.T
        "w_out_t": w_out.T,      # (INNER, DIM)
        "b_out": b_out,
        "w_wa": w_wa,
        "b_wa": b_wa,
        "pos_embedding": pos_embedding,
        "gamma": gamma,
        "beta": beta,
    }

    cfg = dict(heads=HEADS, head_dim=HEAD_DIM, window_size=WS,
               shifted=True, relative_pos_embedding=True, wa=True, mask_flag=True)

    # one-time host-side fold (shift / rearrange / batch block-diagonals / packed slab)
    slab, layout = fold_params(params, batch=B, num_patches=P, dim=DIM, **cfg)

    fwd = jax.jit(functools.partial(prenorm_window_attention, layout=layout, eps=1e-5))
    out = jax.block_until_ready(fwd(x, slab))

    ref = reference_forward(x, params, **cfg)

    assert out.shape == (B, P, DIM), out.shape
    # Softmax divide is now exact; the tolerance headroom only covers MXU-vs-XLA f32 matmul
    # pass differences and permutation-fold reassociation.
    np.testing.assert_allclose(np.asarray(out), np.asarray(ref), rtol=1e-2, atol=1e-3)
    print("KERNEL_OK")
</pallas_src>

<mosaic_0001>
module attributes {stable_mosaic.version = 11 : i64} {
  func.func @_prenorm_wattn_kernel(%arg0: i32, %arg1: memref<32x32xf32, #tpu.memory_space<vmem>>, %arg2: memref<312x96xf32, #tpu.memory_space<vmem>>, %arg3: memref<32x32xf32, #tpu.memory_space<vmem>>) attributes {dimension_semantics = [#tpu.dimension_semantics<arbitrary>], iteration_bounds = array<i64: 1>, scalar_prefetch = 0 : i64, scratch_operands = 0 : i64, tpu.core_type = #tpu.core_type<tc>, window_params = [{pipeline_mode = #tpu.pipeline_mode<synchronous>, transform_indices = @transform_0, window_bounds = array<i64: 32, 32>}, {pipeline_mode = #tpu.pipeline_mode<synchronous>, transform_indices = @transform_1, window_bounds = array<i64: 312, 96>}, {pipeline_mode = #tpu.pipeline_mode<synchronous>, transform_indices = @transform_2, window_bounds = array<i64: 32, 32>}]} {
    %c0 = arith.constant 0 : index
    %c0_0 = arith.constant 0 : index
    %0 = vector.load %arg1[%c0, %c0_0] : memref<32x32xf32, #tpu.memory_space<vmem>>, vector<32x32xf32>
    %c160 = arith.constant 160 : index
    %c0_1 = arith.constant 0 : index
    %1 = vector.load %arg2[%c160, %c0_1] : memref<312x96xf32, #tpu.memory_space<vmem>>, vector<1x32xf32>
    %c168 = arith.constant 168 : index
    %c0_2 = arith.constant 0 : index
    %2 = vector.load %arg2[%c168, %c0_2] : memref<312x96xf32, #tpu.memory_space<vmem>>, vector<1x32xf32>
    %c176 = arith.constant 176 : index
    %c0_3 = arith.constant 0 : index
    %3 = vector.load %arg2[%c176, %c0_3] : memref<312x96xf32, #tpu.memory_space<vmem>>, vector<1x32xf32>
    %cst = arith.constant dense<0.000000e+00> : vector<32xf32>
    %4 = vector.multi_reduction <add>, %0, %cst [1] : vector<32x32xf32> to vector<32xf32>
    %5 = vector.shape_cast %4 : vector<32xf32> to vector<32x1xf32>
    %cst_4 = arith.constant 3.200000e+01 : f32
    %6 = vector.broadcast %cst_4 : f32 to vector<32x1xf32>
    %7 = arith.divf %5, %6 : vector<32x1xf32>
    %8 = vector.broadcast %7 : vector<32x1xf32> to vector<32x32xf32>
    %9 = arith.subf %0, %8 : vector<32x32xf32>
    %10 = arith.mulf %9, %9 : vector<32x32xf32>
    %cst_5 = arith.constant dense<0.000000e+00> : vector<32xf32>
    %11 = vector.multi_reduction <add>, %10, %cst_5 [1] : vector<32x32xf32> to vector<32xf32>
    %12 = vector.shape_cast %11 : vector<32xf32> to vector<32x1xf32>
    %cst_6 = arith.constant 3.200000e+01 : f32
    %13 = vector.broadcast %cst_6 : f32 to vector<32x1xf32>
    %14 = arith.divf %12, %13 : vector<32x1xf32>
    %cst_7 = arith.constant 9.99999974E-6 : f32
    %15 = vector.broadcast %cst_7 : f32 to vector<32x1xf32>
    %16 = arith.addf %14, %15 : vector<32x1xf32>
    %17 = math.rsqrt %16 : vector<32x1xf32>
    %18 = vector.broadcast %17 : vector<32x1xf32> to vector<32x32xf32>
    %19 = arith.mulf %9, %18 : vector<32x32xf32>
    %20 = vector.broadcast %1 : vector<1x32xf32> to vector<32x32xf32>
    %21 = arith.mulf %19, %20 : vector<32x32xf32>
    %22 = vector.broadcast %2 : vector<1x32xf32> to vector<32x32xf32>
    %23 = arith.addf %21, %22 : vector<32x32xf32>
    %cst_8 = arith.constant dense<0.000000e+00> : vector<32xf32>
    %24 = vector.multi_reduction <add>, %23, %cst_8 [1] : vector<32x32xf32> to vector<32xf32>
    %25 = vector.shape_cast %24 : vector<32xf32> to vector<32x1xf32>
    %cst_9 = arith.constant 3.200000e+01 : f32
    %26 = vector.broadcast %cst_9 : f32 to vector<32x1xf32>
    %27 = arith.divf %25, %26 : vector<32x1xf32>
    %c0_10 = arith.constant 0 : index
    %c0_11 = arith.constant 0 : index
    %28 = vector.load %arg2[%c0_10, %c0_11] : memref<312x96xf32, #tpu.memory_space<vmem>>, vector<32x32xf32>
    %c128 = arith.constant 128 : index
    %c0_12 = arith.constant 0 : index
    %29 = vector.load %arg2[%c128, %c0_12] : memref<312x96xf32, #tpu.memory_space<vmem>>, vector<32x1xf32>
    %cst_13 = arith.constant dense<0.000000e+00> : vector<32x1xf32>
    %30 = tpu.matmul %28, %27, %cst_13 {dimension_numbers = #tpu.dot_dimension_numbers<[1], [0], [0], [1], [0, 0, 1, 1], [], []>} : vector<32x32xf32>, vector<32x1xf32>, vector<32x1xf32> -> vector<32x1xf32>
    %31 = arith.addf %30, %29 : vector<32x1xf32>
    %cst_14 = arith.constant 0.000000e+00 : f32
    %32 = vector.broadcast %cst_14 : f32 to vector<32x1xf32>
    %33 = arith.maximumf %31, %32 : vector<32x1xf32>
    %34 = vector.broadcast %33 : vector<32x1xf32> to vector<32x32xf32>
    %35 = arith.mulf %23, %34 : vector<32x32xf32>
    %c32 = arith.constant 32 : index
    %c0_15 = arith.constant 0 : index
    %36 = vector.load %arg2[%c32, %c0_15] : memref<312x96xf32, #tpu.memory_space<vmem>>, vector<32x96xf32>
    %cst_16 = arith.constant dense<0.000000e+00> : vector<32x96xf32>
    %37 = tpu.matmul %35, %36, %cst_16 {dimension_numbers = #tpu.dot_dimension_numbers<[1], [0], [0], [1], [0, 0, 1, 1], [], []>} : vector<32x32xf32>, vector<32x96xf32>, vector<32x96xf32> -> vector<32x96xf32>
    %38 = vector.extract_strided_slice %37 {offsets = [0, 0], sizes = [32, 32], strides = [1, 1]} : vector<32x96xf32> to vector<32x32xf32>
    %cst_17 = arith.constant 0.353553385 : f32
    %39 = vector.broadcast %cst_17 : f32 to vector<32x32xf32>
    %40 = arith.mulf %38, %39 : vector<32x32xf32>
    %41 = vector.extract_strided_slice %37 {offsets = [0, 32], sizes = [32, 32], strides = [1, 1]} : vector<32x96xf32> to vector<32x32xf32>
    %42 = vector.extract_strided_slice %37 {offsets = [0, 64], sizes = [32, 32], strides = [1, 1]} : vector<32x96xf32> to vector<32x32xf32>
    %43 = vector.extract_strided_slice %40 {offsets = [0, 0], sizes = [32, 8], strides = [1, 1]} : vector<32x32xf32> to vector<32x8xf32>
    %44 = vector.extract_strided_slice %41 {offsets = [0, 0], sizes = [32, 8], strides = [1, 1]} : vector<32x32xf32> to vector<32x8xf32>
    %cst_18 = arith.constant dense<0.000000e+00> : vector<32x32xf32>
    %45 = tpu.matmul %43, %44, %cst_18 {dimension_numbers = #tpu.dot_dimension_numbers<[1], [1], [0], [0], [0, 0, 1, 0], [], []>} : vector<32x8xf32>, vector<32x8xf32>, vector<32x32xf32> -> vector<32x32xf32>
    %46 = vector.extract_strided_slice %40 {offsets = [0, 8], sizes = [32, 8], strides = [1, 1]} : vector<32x32xf32> to vector<32x8xf32>
    %47 = vector.extract_strided_slice %41 {offsets = [0, 8], sizes = [32, 8], strides = [1, 1]} : vector<32x32xf32> to vector<32x8xf32>
    %cst_19 = arith.constant dense<0.000000e+00> : vector<32x32xf32>
    %48 = tpu.matmul %46, %47, %cst_19 {dimension_numbers = #tpu.dot_dimension_numbers<[1], [1], [0], [0], [0, 0, 1, 0], [], []>} : vector<32x8xf32>, vector<32x8xf32>, vector<32x32xf32> -> vector<32x32xf32>
    %49 = vector.extract_strided_slice %40 {offsets = [0, 16], sizes = [32, 8], strides = [1, 1]} : vector<32x32xf32> to vector<32x8xf32>
    %50 = vector.extract_strided_slice %41 {offsets = [0, 16], sizes = [32, 8], strides = [1, 1]} : vector<32x32xf32> to vector<32x8xf32>
    %cst_20 = arith.constant dense<0.000000e+00> : vector<32x32xf32>
    %51 = tpu.matmul %49, %50, %cst_20 {dimension_numbers = #tpu.dot_dimension_numbers<[1], [1], [0], [0], [0, 0, 1, 0], [], []>} : vector<32x8xf32>, vector<32x8xf32>, vector<32x32xf32> -> vector<32x32xf32>
    %52 = vector.extract_strided_slice %40 {offsets = [0, 24], sizes = [32, 8], strides = [1, 1]} : vector<32x32xf32> to vector<32x8xf32>
    %53 = vector.extract_strided_slice %41 {offsets = [0, 24], sizes = [32, 8], strides = [1, 1]} : vector<32x32xf32> to vector<32x8xf32>
    %cst_21 = arith.constant dense<0.000000e+00> : vector<32x32xf32>
    %54 = tpu.matmul %52, %53, %cst_21 {dimension_numbers = #tpu.dot_dimension_numbers<[1], [1], [0], [0], [0, 0, 1, 0], [], []>} : vector<32x8xf32>, vector<32x8xf32>, vector<32x32xf32> -> vector<32x32xf32>
    %c184 = arith.constant 184 : index
    %c0_22 = arith.constant 0 : index
    %55 = vector.load %arg2[%c184, %c0_22] : memref<312x96xf32, #tpu.memory_space<vmem>>, vector<128x32xf32>
    %56 = tpu.concatenate %45, %48, %51, %54 in 0 : vector<32x32xf32>, vector<32x32xf32>, vector<32x32xf32>, vector<32x32xf32> -> vector<128x32xf32>
    %57 = arith.addf %56, %55 : vector<128x32xf32>
    %cst_23 = arith.constant dense<0xFF800000> : vector<128xf32>
    %58 = vector.multi_reduction <maximumf>, %57, %cst_23 [1] : vector<128x32xf32> to vector<128xf32>
    %59 = vector.shape_cast %58 : vector<128xf32> to vector<128x1xf32>
    %60 = vector.broadcast %59 : vector<128x1xf32> to vector<128x32xf32>
    %61 = arith.subf %57, %60 : vector<128x32xf32>
    %62 = math.exp %61 : vector<128x32xf32>
    %cst_24 = arith.constant dense<0.000000e+00> : vector<128xf32>
    %63 = vector.multi_reduction <add>, %62, %cst_24 [1] : vector<128x32xf32> to vector<128xf32>
    %64 = vector.shape_cast %63 : vector<128xf32> to vector<128x1xf32>
    %65 = vector.broadcast %64 : vector<128x1xf32> to vector<128x32xf32>
    %66 = arith.divf %62, %65 : vector<128x32xf32>
    %c64 = arith.constant 64 : index
    %c0_25 = arith.constant 0 : index
    %67 = vector.load %arg2[%c64, %c0_25] : memref<312x96xf32, #tpu.memory_space<vmem>>, vector<32x32xf32>
    %cst_26 = arith.constant 0.000000e+00 : f32
    %68 = vector.broadcast %cst_26 : f32 to vector<32x32xf32>
    %69 = vector.extract_strided_slice %66 {offsets = [0, 0], sizes = [32, 32], strides = [1, 1]} : vector<128x32xf32> to vector<32x32xf32>
    %70 = vector.extract_strided_slice %42 {offsets = [0, 0], sizes = [32, 8], strides = [1, 1]} : vector<32x32xf32> to vector<32x8xf32>
    %cst_27 = arith.constant dense<0.000000e+00> : vector<32x8xf32>
    %71 = tpu.matmul %69, %70, %cst_27 {dimension_numbers = #tpu.dot_dimension_numbers<[1], [0], [0], [1], [0, 0, 1, 1], [], []>} : vector<32x32xf32>, vector<32x8xf32>, vector<32x8xf32> -> vector<32x8xf32>
    %72 = vector.extract_strided_slice %67 {offsets = [0, 0], sizes = [8, 32], strides = [1, 1]} : vector<32x32xf32> to vector<8x32xf32>
    %cst_28 = arith.constant dense<0.000000e+00> : vector<32x32xf32>
    %73 = tpu.matmul %71, %72, %cst_28 {dimension_numbers = #tpu.dot_dimension_numbers<[1], [0], [0], [1], [0, 0, 1, 1], [], []>} : vector<32x8xf32>, vector<8x32xf32>, vector<32x32xf32> -> vector<32x32xf32>
    %74 = arith.addf %68, %73 : vector<32x32xf32>
    %75 = vector.extract_strided_slice %66 {offsets = [32, 0], sizes = [32, 32], strides = [1, 1]} : vector<128x32xf32> to vector<32x32xf32>
    %76 = vector.extract_strided_slice %42 {offsets = [0, 8], sizes = [32, 8], strides = [1, 1]} : vector<32x32xf32> to vector<32x8xf32>
    %cst_29 = arith.constant dense<0.000000e+00> : vector<32x8xf32>
    %77 = tpu.matmul %75, %76, %cst_29 {dimension_numbers = #tpu.dot_dimension_numbers<[1], [0], [0], [1], [0, 0, 1, 1], [], []>} : vector<32x32xf32>, vector<32x8xf32>, vector<32x8xf32> -> vector<32x8xf32>
    %78 = vector.extract_strided_slice %67 {offsets = [8, 0], sizes = [8, 32], strides = [1, 1]} : vector<32x32xf32> to vector<8x32xf32>
    %cst_30 = arith.constant dense<0.000000e+00> : vector<32x32xf32>
    %79 = tpu.matmul %77, %78, %cst_30 {dimension_numbers = #tpu.dot_dimension_numbers<[1], [0], [0], [1], [0, 0, 1, 1], [], []>} : vector<32x8xf32>, vector<8x32xf32>, vector<32x32xf32> -> vector<32x32xf32>
    %80 = arith.addf %74, %79 : vector<32x32xf32>
    %81 = vector.extract_strided_slice %66 {offsets = [64, 0], sizes = [32, 32], strides = [1, 1]} : vector<128x32xf32> to vector<32x32xf32>
    %82 = vector.extract_strided_slice %42 {offsets = [0, 16], sizes = [32, 8], strides = [1, 1]} : vector<32x32xf32> to vector<32x8xf32>
    %cst_31 = arith.constant dense<0.000000e+00> : vector<32x8xf32>
    %83 = tpu.matmul %81, %82, %cst_31 {dimension_numbers = #tpu.dot_dimension_numbers<[1], [0], [0], [1], [0, 0, 1, 1], [], []>} : vector<32x32xf32>, vector<32x8xf32>, vector<32x8xf32> -> vector<32x8xf32>
    %84 = vector.extract_strided_slice %67 {offsets = [16, 0], sizes = [8, 32], strides = [1, 1]} : vector<32x32xf32> to vector<8x32xf32>
    %cst_32 = arith.constant dense<0.000000e+00> : vector<32x32xf32>
    %85 = tpu.matmul %83, %84, %cst_32 {dimension_numbers = #tpu.dot_dimension_numbers<[1], [0], [0], [1], [0, 0, 1, 1], [], []>} : vector<32x8xf32>, vector<8x32xf32>, vector<32x32xf32> -> vector<32x32xf32>
    %86 = arith.addf %80, %85 : vector<32x32xf32>
    %87 = vector.extract_strided_slice %66 {offsets = [96, 0], sizes = [32, 32], strides = [1, 1]} : vector<128x32xf32> to vector<32x32xf32>
    %88 = vector.extract_strided_slice %42 {offsets = [0, 24], sizes = [32, 8], strides = [1, 1]} : vector<32x32xf32> to vector<32x8xf32>
    %cst_33 = arith.constant dense<0.000000e+00> : vector<32x8xf32>
    %89 = tpu.matmul %87, %88, %cst_33 {dimension_numbers = #tpu.dot_dimension_numbers<[1], [0], [0], [1], [0, 0, 1, 1], [], []>} : vector<32x32xf32>, vector<32x8xf32>, vector<32x8xf32> -> vector<32x8xf32>
    %90 = vector.extract_strided_slice %67 {offsets = [24, 0], sizes = [8, 32], strides = [1, 1]} : vector<32x32xf32> to vector<8x32xf32>
    %cst_34 = arith.constant dense<0.000000e+00> : vector<32x32xf32>
    %91 = tpu.matmul %89, %90, %cst_34 {dimension_numbers = #tpu.dot_dimension_numbers<[1], [0], [0], [1], [0, 0, 1, 1], [], []>} : vector<32x8xf32>, vector<8x32xf32>, vector<32x32xf32> -> vector<32x32xf32>
    %92 = arith.addf %86, %91 : vector<32x32xf32>
    %c96 = arith.constant 96 : index
    %c0_35 = arith.constant 0 : index
    %93 = vector.load %arg2[%c96, %c0_35] : memref<312x96xf32, #tpu.memory_space<vmem>>, vector<32x32xf32>
    %cst_36 = arith.constant dense<0.000000e+00> : vector<32x32xf32>
    %94 = tpu.matmul %93, %92, %cst_36 {dimension_numbers = #tpu.dot_dimension_numbers<[1], [0], [0], [1], [0, 0, 1, 1], [], []>} : vector<32x32xf32>, vector<32x32xf32>, vector<32x32xf32> -> vector<32x32xf32>
    %95 = vector.broadcast %3 : vector<1x32xf32> to vector<32x32xf32>
    %96 = arith.addf %94, %95 : vector<32x32xf32>
    %c0_37 = arith.constant 0 : index
    %c0_38 = arith.constant 0 : index
    %97 = vector.load %arg3[%c0_37, %c0_38] : memref<32x32xf32, #tpu.memory_space<vmem>>, vector<32x32xf32>
    tpu.vector_store %arg3[%c0_37, %c0_38], %96 {strides = array<i32>} : memref<32x32xf32, #tpu.memory_space<vmem>>, vector<32x32xf32>,
    return
  }
  func.func @transform_0(%arg0: i32) -> (i32, i32) {
    %c0_i32 = arith.constant 0 : i32
    %c0_i32_0 = arith.constant 0 : i32
    %c0_i32_1 = arith.constant 0 : i32
    return %c0_i32, %c0_i32_0 : i32, i32
  }
  func.func @transform_1(%arg0: i32) -> (i32, i32) {
    %c0_i32 = arith.constant 0 : i32
    %c0_i32_0 = arith.constant 0 : i32
    %c0_i32_1 = arith.constant 0 : i32
    return %c0_i32, %c0_i32_0 : i32, i32
  }
  func.func @transform_2(%arg0: i32) -> (i32, i32) {
    %c0_i32 = arith.constant 0 : i32
    %c0_i32_0 = arith.constant 0 : i32
    %c0_i32_1 = arith.constant 0 : i32
    return %c0_i32, %c0_i32_0 : i32, i32
  }
}

</mosaic_0001>

<bundles_post_ra>
// kernel: prenorm_window_attention.1
= control target key start
LH: loop header
LB: loop body
LE: loop exit
PB: predicated region body
PF: predicated region fallthrough
CT: control target
= control target key end

     0   :  { %vm19_vm0 = vcmask 261120   ;;  %s2257_s0 = inlined_call_operand.vmem [shape: f32[32,32], index: 0, kind: input, shape index: {}]   ;;  %s2258_s1 = inlined_call_operand.vmem [shape: f32[312,96], index: 1, kind: input, shape index: {}]   ;;  %s2259_s2 = inlined_call_operand.hbm [shape: f32[32,32], index: 2, kind: output, shape index: {}]  }
   0x1   :  { %v15_v0 = vld [vmem:[%s2257_s0 + $0x18] sm:$0xff]  ;;  %v13_v1 = vld [vmem:[%s2257_s0 + $0x8] sm:$0xff] }
   0x2   :  { %v29_v2 = vsel %vm19_vm0, %v15_v0, 0.0  ;;  %v23_v3 = vsel %vm19_vm0, %v13_v1, 0.0 }
   0x3   :  { %30 = vadd.xlane.f32.xlu0 %v29_v2  ;;  %24 = vadd.xlane.f32.xlu1 %v23_v3 }
   0x4   :  { %7 = vsyncpa [#allocation3], 0  ;;  %v14_v4 = vld [vmem:[%s2257_s0 + $0x10] sm:$0xff]  ;;  %v12_v5 = vld [vmem:[%s2257_s0] sm:$0xff]  ;;  %v1630_v8 = vmov 32.0   ;;  %s1632_s16 = smov 96  }
   0x5   :  { %v26_v6 = vsel %vm19_vm0, %v14_v4, 0.0  ;;  %v20_v7 = vsel %vm19_vm0, %v12_v5, 0.0  ;;  %1530 = vrcp.f32 %v1630_v8  ;;  %v1527_v63 = vld [vmem:[%s2258_s1 + $0xa0] ss:$0 sm:$0xff]  ;;  %s1633_s0 = smov 88   ;;  %s1634_s17 = smov 120  }
   0x6   :  { %s1635_s18 = smov 80   ;;  %s1636_s19 = smov 72   ;;  %vm279_vm14 = vcmask 64512  }
   0x7   :  { %s1637_s20 = smov 104   ;;  %s1638_s21 = smov 112  }
   0x8   :  { %s1639_s30 = smov 56   ;;  %s1640_s22 = smov 64  }
   0x9   :  { %s1641_s23 = smov 48   ;;  %s1642_s28 = smov 40  }
   0xb   :  { %27 = vadd.xlane.f32.xlu0 %v26_v6  ;;  %21 = vadd.xlane.f32.xlu1 %v20_v7  ;;  %v1531_v9 = vpop.eup %1530 }
   0xc   :  { %v33_v10 = vmul.f32 32.0, %v1531_v9  ;;  %vm37_vm1 = vweird.f32 %v1531_v9 }
   0xe   :  { %v34_v11 = vsub.f32 1.0, %v33_v10 }
  0x10   :  { %v35_v12 = vmul.f32 %v1531_v9, %v34_v11 }
  0x12   :  { %v36_v13 = vadd.f32 %v1531_v9, %v35_v12 }
  0x14   :  { %v1677_v14 = vsel %vm37_vm1, %v1531_v9, %v36_v13 }
  0x76   :  { %v31_v15 = vpop.xlane.xlu0 %30  ;;  %v25_v16 = vpop.xlane.xlu1 %24 }
  0x77   :  { %v42_v17 = vmul.f32 %v1677_v14, %v31_v15  ;;  %v40_v18 = vmul.f32 %v1677_v14, %v25_v16 }
  0x79   :  { %v46_v19 = vsub.f32 %v15_v0, %v42_v17  ;;  %v1681_v20 = vsub.f32 %v13_v1, %v40_v18 }
  0x7b   :  { %v50_v21 = vmul.f32 %v46_v19, %v46_v19  ;;  %v48_v22 = vmul.f32 %v1681_v20, %v1681_v20 }
  0x7d   :  { %v60_v23 = vsel %vm19_vm0, %v50_v21, 0.0  ;;  %v54_v24 = vsel %vm19_vm0, %v48_v22, 0.0 }
  0x7e   :  { %61 = vadd.xlane.f32.xlu2 %v60_v23  ;;  %v28_v25 = vpop.xlane.xlu0 %27  ;;  %55 = vadd.xlane.f32.xlu0 %v54_v24  ;;  %v22_v26 = vpop.xlane.xlu1 %21 }
  0x7f   :  { %v41_v27 = vmul.f32 %v1677_v14, %v28_v25  ;;  %v39_v28 = vmul.f32 %v1677_v14, %v22_v26 }
  0x81   :  { %v1689_v29 = vsub.f32 %v14_v4, %v41_v27  ;;  %v1691_v30 = vsub.f32 %v12_v5, %v39_v28  ;;  %v1528_v4 = vld [vmem:[%s2258_s1 + $0xa8] ss:$0 sm:$0xff] }
  0x83   :  { %v49_v31 = vmul.f32 %v1689_v29, %v1689_v29  ;;  %v47_v32 = vmul.f32 %v1691_v30, %v1691_v30 }
  0x85   :  { %v57_v33 = vsel %vm19_vm0, %v49_v31, 0.0  ;;  %v51_v34 = vsel %vm19_vm0, %v47_v32, 0.0 }
  0x86   :  { %58 = vadd.xlane.f32.xlu2 %v57_v33  ;;  %52 = vadd.xlane.f32.xlu1 %v51_v34 }
  0xf1   :  { %v62_v35 = vpop.xlane.xlu2 %61  ;;  %v56_v36 = vpop.xlane.xlu0 %55 }
  0xf2   :  { %v66_v37 = vmul.f32 %v62_v35, %v1677_v14  ;;  %v64_v38 = vmul.f32 %v56_v36, %v1677_v14 }
  0xf4   :  { %v70_v39 = vadd.f32 1e-05, %v66_v37  ;;  %v68_v40 = vadd.f32 1e-05, %v64_v38  ;;  %v141_v38 = vld [vmem:[%s2258_s1] sm:$0xff] }
  0xf6   :  { %1532 = vrsqrt.f32 %v70_v39  ;;  %vm107_vm4 = vweird.f32 %v70_v39  ;;  %vm87_vm6 = vweird.f32 %v68_v40 }
  0xf7   :  { %1534 = vrsqrt.f32 %v68_v40 }
  0xf9   :  { %v59_v41 = vpop.xlane.xlu2 %58  ;;  %v53_v42 = vpop.xlane.xlu1 %52 }
  0xfa   :  { %v65_v43 = vmul.f32 %v59_v41, %v1677_v14  ;;  %v63_v44 = vmul.f32 %v53_v42, %v1677_v14  ;;  %v1631_v41 = vmov 0   ;;  %v145_v42 = vld [vmem:[%s2258_s1 + $0x80] sm:$0xff] }
  0xfb   :  { %1484 = vset.pattern.permute.xlu0 %v1631_v41  ;;  %1486 = vset.pattern.permute.xlu2 %v1631_v41 }
  0xfc   :  { %v1533_v45 = vpop.eup %1532  ;;  %v69_v46 = vadd.f32 1e-05, %v65_v43  ;;  %v67_v47 = vadd.f32 1e-05, %v63_v44  ;;  %1485 = vset.pattern.permute.xlu1 %v1631_v41 }
  0xfd   :  { %v1535_v48 = vpop.eup %1534  ;;  %v102_v49 = vmul.f32 %v1533_v45, %v70_v39  ;;  %vm108_vm2 = vweird.f32 %v1533_v45  ;;  %v143_v39 = vld [vmem:[%s2258_s1 + $0x10] sm:$0xff] }
  0xfe   :  { %v82_v50 = vmul.f32 %v1535_v48, %v68_v40  ;;  %1536 = vrsqrt.f32 %v69_v46  ;;  %vm88_vm3 = vweird.f32 %v1535_v48  ;;  %vm109_vm5 = vmor %vm107_vm4, %vm108_vm2  ;;  %vm97_vm10 = vweird.f32 %v69_v46  ;;  %v144_v40 = vld [vmem:[%s2258_s1 + $0x18] sm:$0xff] }
  0xff   :  { %v103_v51 = vmul.f32 %v1533_v45, %v102_v49  ;;  %1538 = vrsqrt.f32 %v67_v47  ;;  %vm89_vm7 = vmor %vm87_vm6, %vm88_vm3  ;;  %vm77_vm12 = vweird.f32 %v67_v47 }
 0x100   :  { %v83_v52 = vmul.f32 %v1535_v48, %v82_v50 }
 0x101   :  { %v104_v53 = vmul.f32 0.5, %v103_v51 }
 0x102   :  { %v84_v54 = vmul.f32 0.5, %v83_v52 }
 0x103   :  { %v105_v55 = vsub.f32 1.5, %v104_v53 }
 0x104   :  { %v1537_v56 = vpop.eup %1536  ;;  %v85_v57 = vsub.f32 1.5, %v84_v54  ;;  %v148_v54 = vld [vmem:[%s2258_s1 + $0x98] sm:$0xff] }
 0x105   :  { %v1539_v58 = vpop.eup %1538  ;;  %v106_v59 = vmul.f32 %v1533_v45, %v105_v55  ;;  %v92_v60 = vmul.f32 %v1537_v56, %v69_v46  ;;  %vm98_vm8 = vweird.f32 %v1537_v56  ;;  %v147_v46 = vld [vmem:[%s2258_s1 + $0x90] sm:$0xff] }
 0x106   :  { %v86_v61 = vmul.f32 %v1535_v48, %v85_v57  ;;  %v72_v62 = vmul.f32 %v1539_v58, %v67_v47  ;;  %vm78_vm9 = vweird.f32 %v1539_v58  ;;  %vm99_vm11 = vmor %vm97_vm10, %vm98_vm8 }
 0x107   :  { %v93_v0 = vmul.f32 %v1537_v56, %v92_v60  ;;  %v110_v1 = vsel %vm109_vm5, %v1533_v45, %v106_v59  ;;  %vm79_vm13 = vmor %vm77_vm12, %vm78_vm9  ;;  %v220_v59 = vld [vmem:[%s2258_s1 + $0x30] sm:$0xff]  ;;  %v219_v60 = vld [vmem:[%s2258_s1 + $0x28] sm:$0xff] }
 0x108   :  { %v73_v2 = vmul.f32 %v1539_v58, %v72_v62  ;;  %v114_v3 = vmul.f32 %v110_v1, %v46_v19  ;;  %v90_v5 = vsel %vm89_vm7, %v1535_v48, %v86_v61  ;;  %v146_v48 = vld [vmem:[%s2258_s1 + $0x88] sm:$0xff]  ;;  %v218_v61 = vld [vmem:[%s2258_s1 + $0x20] sm:$0xff] }
 0x109   :  { %v94_v6 = vmul.f32 0.5, %v93_v0  ;;  %v112_v7 = vmul.f32 %v90_v5, %v1681_v20 }
 0x10a   :  { %v74_v8 = vmul.f32 0.5, %v73_v2  ;;  %v119_v9 = vmul.f32 %v1527_v63, %v114_v3 }
 0x10b   :  { %v95_v10 = vsub.f32 1.5, %v94_v6  ;;  %v117_v11 = vmul.f32 %v1527_v63, %v112_v7 }
 0x10c   :  { %v75_v12 = vsub.f32 1.5, %v74_v8  ;;  %v1710_v13 = vadd.f32 %v1528_v4, %v119_v9 }
 0x10d   :  { %v96_v15 = vmul.f32 %v1537_v56, %v95_v10  ;;  %v1712_v16 = vadd.f32 %v1528_v4, %v117_v11 }
 0x10e   :  { %v76_v17 = vmul.f32 %v1539_v58, %v75_v12  ;;  %v134_v18 = vsel %vm19_vm0, %v1710_v13, 0.0 }
 0x10f   :  { %135 = vadd.xlane.f32.xlu2 %v134_v18  ;;  %v128_v19 = vsel %vm19_vm0, %v1712_v16, 0.0  ;;  %v100_v20 = vsel %vm99_vm11, %v1537_v56, %v96_v15 }
 0x110   :  { %129 = vadd.xlane.f32.xlu1 %v128_v19  ;;  %v113_v21 = vmul.f32 %v100_v20, %v1689_v29  ;;  %v80_v22 = vsel %vm79_vm13, %v1539_v58, %v76_v17  ;;  %v221_v58 = vld [vmem:[%s2258_s1 + $0x38] sm:$0xff] }
 0x111   :  { %v111_v23 = vmul.f32 %v80_v22, %v1691_v30  ;;  %246 = vmatpush.msra.mxu1 %v221_v58 }
 0x112   :  { %v118_v24 = vmul.f32 %v1527_v63, %v113_v21 }
 0x113   :  { %v116_v25 = vmul.f32 %v1527_v63, %v111_v23  ;;  %247 = vmatpush.msra.mxu1 %v220_v59 }
 0x114   :  { %v1720_v26 = vadd.f32 %v1528_v4, %v118_v24 }
 0x115   :  { %v121_v27 = vadd.f32 %v1528_v4, %v116_v25  ;;  %248 = vmatpush.msra.mxu1 %v219_v60 }
 0x116   :  { %v131_v28 = vsel %vm19_vm0, %v1720_v26, 0.0 }
 0x117   :  { %132 = vadd.xlane.f32.xlu0 %v131_v28  ;;  %v125_v31 = vsel %vm19_vm0, %v121_v27, 0.0  ;;  %249 = vmatpush.msra.mxu1 %v218_v61 }
 0x118   :  { %126 = vadd.xlane.f32.xlu2 %v125_v31 }
 0x182   :  { %v136_v32 = vpop.xlane.xlu2 %135 }
 0x183   :  { %v140_v33 = vmul.f32 %v136_v32, %v1677_v14  ;;  %v130_v29 = vpop.xlane.xlu1 %129 }
 0x184   :  { %v138_v36 = vmul.f32 %v130_v29, %v1677_v14 }
 0x185   :  { %173 = vmatpush.msra.mxu0 %v140_v33  ;;  %1460 = vmatpush.msra.mxu2 %v140_v33 }
 0x18a   :  { %v133_v34 = vpop.xlane.xlu0 %132 }
 0x18b   :  { %v139_v30 = vmul.f32 %v133_v34, %v1677_v14  ;;  %v127_v35 = vpop.xlane.xlu2 %126 }
 0x18c   :  { %v137_v37 = vmul.f32 %v127_v35, %v1677_v14  ;;  %v142_v14 = vld [vmem:[%s2258_s1 + $0x8] sm:$0xff] }
 0x18d   :  { %174 = vmatpush.msra.mxu0 %v139_v30  ;;  %1461 = vmatpush.msra.mxu2 %v139_v30 }
 0x18f   :  { %175 = vmatpush.msra.mxu0 %v138_v36  ;;  %1462 = vmatpush.msra.mxu2 %v138_v36 }
 0x191   :  { %176 = vmatpush.msra.mxu0 %v137_v37  ;;  %1463 = vmatpush.msra.mxu2 %v137_v37 }
 0x192   :  { %1384 = vmatmul.msk.f32.vlgmr.msra.gmra.mxu0 %vm19_vm0, %v141_v38  ;;  %1386 = vmatmul.msk.f32.vlgmr.msra.gmra.mxu2 %vm19_vm0, %v143_v39 }
 0x19a   :  { %1385 = vmatmul.msk.f32.gmra.mxu0 %vm19_vm0, %v142_v14  ;;  %1387 = vmatmul.msk.f32.gmra.mxu2 %vm19_vm0, %v144_v40 }
 0x20f   :  { %v178_v43 = vpop.f32.mrf.mxu0 }
 0x210   :  { %v179_v44 = vadd.f32 %v178_v43, %v145_v42 }
 0x212   :  { %v190_v45 = vmax.f32 %v179_v44, 0.0 }
 0x214   :  { %196 = vperm.xlu0 %1484, %v190_v45   ;;  %v516_v45 = vld [vmem:[%s2258_s1 + $0xd8] sm:$0xff] }
 0x215   :  { %v184_v47 = vpop.f32.mrf.mxu2 }
 0x216   :  { %v185_v49 = vadd.f32 %v184_v47, %v147_v46 }
 0x217   :  { %v181_v50 = vpop.f32.mrf.mxu0 }
 0x218   :  { %v192_v51 = vmax.f32 %v185_v49, 0.0  ;;  %v182_v52 = vadd.f32 %v181_v50, %v146_v48  ;;  %v517_v49 = vld [vmem:[%s2258_s1 + $0xe0] sm:$0xff] }
 0x21a   :  { %v191_v53 = vmax.f32 %v182_v52, 0.0  ;;  %206 = vperm.xlu2 %1486, %v192_v51  }
 0x21c   :  { %201 = vperm.xlu1 %1485, %v191_v53   ;;  %v518_v53 = vld [vmem:[%s2258_s1 + $0xe8] sm:$0xff] }
 0x21d   :  { %v187_v55 = vpop.f32.mrf.mxu2 }
 0x21e   :  { %v188_v56 = vadd.f32 %v187_v55, %v148_v54 }
 0x220   :  { %v193_v57 = vmax.f32 %v188_v56, 0.0 }
 0x222   :  { %211 = vperm.xlu2 %1486, %v193_v57   ;;  %v519_v57 = vld [vmem:[%s2258_s1 + $0xf0] sm:$0xff] }
 0x274   :  { %v207_v2 = vpop.permute.xlu2 %206 }
 0x275   :  { %v216_v3 = vmul.f32 %v207_v2, %v1720_v26 }
 0x27c   :  { %v212_v4 = vpop.permute.xlu2 %211 }
 0x27d   :  { %v217_v5 = vmul.f32 %v212_v4, %v1710_v13 }
 0x286   :  { %v197_v62 = vpop.permute.xlu0 %196 }
 0x287   :  { %v214_v63 = vmul.f32 %v197_v62, %v121_v27 }
 0x289   :  { %1388 = vmatmul.msk.f32.vlgmr.msra.gmra.mxu1 %vm19_vm0, %v214_v63 }
 0x28e   :  { %v202_v0 = vpop.permute.xlu1 %201 }
 0x28f   :  { %v215_v1 = vmul.f32 %v202_v0, %v1712_v16 }
 0x291   :  { %1389 = vmatmul.msk.f32.gmra.mxu1 %vm19_vm0, %v215_v1 }
 0x299   :  { %1390 = vmatmul.msk.f32.gmra.mxu1 %vm19_vm0, %v216_v3 }
 0x2a1   :  { %1391 = vmatmul.msk.f32.gmra.mxu1 %vm19_vm0, %v217_v5 }
 0x306   :  { %v251_v6 = vpop.f32.mrf.mxu1 }
 0x307   :  { %271 = vrot.lane.b32.xlu0 %v251_v6, %s1632_s16  ;;  %v263_v13 = vmul.f32 0.35355338, %v251_v6 }
 0x30e   :  { %v254_v7 = vpop.f32.mrf.mxu1 }
 0x30f   :  { %339 = vrot.lane.b32.xlu0 %v254_v7, %s1633_s0  ;;  %v1776_v8 = vpack.i.bf16 %v251_v6, %v254_v7  ;;  %v1778_v9 = vmul.f32 0.35355338, %v254_v7 }
 0x316   :  { %v1780_v10 = vpop.f32.mrf.mxu1 }
 0x317   :  { %331 = vrot.lane.b32.xlu0 %v1778_v9, %s1634_s17  ;;  %275 = vrot.lane.b32.xlu2 %v1780_v10, %s1632_s16  ;;  %v265_v12 = vmul.f32 0.35355338, %v1780_v10 }
 0x31e   :  { %v1784_v11 = vpop.f32.mrf.mxu1 }
 0x31f   :  { %404 = vrot.lane.b32.xlu0 %v1784_v11, %s1635_s18  ;;  %343 = vrot.lane.b32.xlu2 %v1784_v11, %s1633_s0  ;;  %v1794_v15 = vmul.f32 0.35355338, %v1784_v11  ;;  %v1867_v61 = vpack.i.bf16 %v1780_v10, %v1784_v11 }
 0x320   :  { %277 = vrot.lane.b32.xlu1 %v1784_v11, %s1632_s16 }
 0x327   :  { %398 = vrot.lane.b32.xlu0 %v251_v6, %s1635_s18  ;;  %337 = vrot.lane.b32.xlu2 %v251_v6, %s1633_s0 }
 0x328   :  { %273 = vrot.lane.b32.xlu1 %v254_v7, %s1632_s16 }
 0x32f   :  { %463 = vrot.lane.b32.xlu0 %v1780_v10, %s1636_s19  ;;  %333 = vrot.lane.b32.xlu2 %v265_v12, %s1634_s17 }
 0x330   :  { %341 = vrot.lane.b32.xlu1 %v1780_v10, %s1633_s0 }
 0x337   :  { %459 = vrot.lane.b32.xlu0 %v251_v6, %s1636_s19  ;;  %402 = vrot.lane.b32.xlu2 %v1780_v10, %s1635_s18 }
 0x338   :  { %329 = vrot.lane.b32.xlu1 %v263_v13, %s1634_s17 }
 0x33f   :  { %465 = vrot.lane.b32.xlu2 %v1784_v11, %s1636_s19 }
 0x340   :  { %335 = vrot.lane.b32.xlu1 %v1794_v15, %s1634_s17 }
 0x347   :  { %461 = vrot.lane.b32.xlu2 %v254_v7, %s1636_s19 }
 0x348   :  { %400 = vrot.lane.b32.xlu1 %v254_v7, %s1635_s18  ;;  %s1643_s18 = smov [#allocation2]  }
 0x349   :  { %s1370_s19 = sshll.u32 %s1643_s18, 4  ;;  %s1371_s19 = int_to_ptr.vmem [resolvable:$true] %s1370_s19 }
 0x34f   :  { %451 = vrot.lane.b32.xlu2 %v263_v13, %s1637_s20 }
 0x350   :  { %390 = vrot.lane.b32.xlu1 %v263_v13, %s1638_s21 }
 0x357   :  { %453 = vrot.lane.b32.xlu2 %v1778_v9, %s1637_s20 }
 0x358   :  { %392 = vrot.lane.b32.xlu1 %v1778_v9, %s1638_s21 }
 0x360   :  { %394 = vrot.lane.b32.xlu1 %v265_v12, %s1638_s21 }
 0x368   :  { %396 = vrot.lane.b32.xlu1 %v1794_v15, %s1638_s21 }
 0x370   :  { %455 = vrot.lane.b32.xlu1 %v265_v12, %s1637_s20 }
 0x371   :  { %v276_v16 = vpop.permute.xlu2 %275 }
 0x379   :  { %v272_v17 = vpop.permute.xlu0 %271  ;;  %v344_v18 = vpop.permute.xlu2 %343 }
 0x381   :  { %v340_v19 = vpop.permute.xlu0 %339  ;;  %v338_v20 = vpop.permute.xlu2 %337 }
 0x389   :  { %v332_v21 = vpop.permute.xlu0 %331  ;;  %v334_v22 = vpop.permute.xlu2 %333 }
 0x391   :  { %v405_v23 = vpop.permute.xlu0 %404  ;;  %v403_v24 = vpop.permute.xlu2 %402 }
 0x392   :  { %v278_v25 = vpop.permute.xlu1 %277  ;;  %1408 = vmatpush.xpose.msk.msrb.mxu0 %vm279_vm14, %v405_v23 }
 0x393   :  { %1392 = vmatpush.xpose.msk.msrb.mxu2 %vm279_vm14, %v278_v25  ;;  %1464 = vmatpush.xpose.msk.msra.mxu3 %vm279_vm14, %v278_v25 }
 0x396   :  { %1409 = vmatpush.xpose.msk.msrb.mxu0 %vm279_vm14, %v403_v24 }
 0x397   :  { %1393 = vmatpush.xpose.msk.msrb.mxu2 %vm279_vm14, %v276_v16  ;;  %1465 = vmatpush.xpose.msk.msra.mxu3 %vm279_vm14, %v276_v16 }
 0x399   :  { %v399_v26 = vpop.permute.xlu0 %398  ;;  %v466_v27 = vpop.permute.xlu2 %465 }
 0x39a   :  { %v274_v28 = vpop.permute.xlu1 %273  ;;  %1416 = vmatpush.xpose.msk.msrb.mxu1 %vm279_vm14, %v466_v27 }
 0x39b   :  { %1394 = vmatpush.xpose.msk.msrb.mxu2 %vm279_vm14, %v274_v28  ;;  %1466 = vmatpush.xpose.msk.msra.mxu3 %vm279_vm14, %v274_v28  ;;  %v513_v28 = vld [vmem:[%s2258_s1 + $0xc0] sm:$0xff] }
 0x39f   :  { %1395 = vmatpush.xpose.msk.msrb.mxu2 %vm279_vm14, %v272_v17  ;;  %1467 = vmatpush.xpose.msk.msra.mxu3 %vm279_vm14, %v272_v17 }
 0x3a1   :  { %v464_v31 = vpop.permute.xlu0 %463  ;;  %v462_v32 = vpop.permute.xlu2 %461 }
 0x3a2   :  { %1396 = vmatmul.msk.f32.vlgmr.msrb.gmra.mxu2 %vm279_vm14, %v263_v13  ;;  %1397 = vmatmul.msk.f32.vlgmr.msra.gmra.mxu3 %vm279_vm14, %v1778_v9  ;;  %v342_v33 = vpop.permute.xlu1 %341 }
 0x3a3   :  { %1400 = vmatpush.xpose.msk.msrb.mxu3 %vm279_vm14, %v344_v18  ;;  %1417 = vmatpush.xpose.msk.msrb.mxu1 %vm279_vm14, %v464_v31 }
 0x3a7   :  { %1401 = vmatpush.xpose.msk.msrb.mxu3 %vm279_vm14, %v342_v33  ;;  %1418 = vmatpush.xpose.msk.msrb.mxu1 %vm279_vm14, %v462_v32  ;;  %v524_v32 = vld [vmem:[%s2258_s1 + $0x118] sm:$0xff] }
 0x3a9   :  { %v460_v29 = vpop.permute.xlu0 %459  ;;  %v452_v30 = vpop.permute.xlu2 %451 }
 0x3aa   :  { %1398 = vmatmul.msk.f32.gmra.mxu3 %vm279_vm14, %v265_v12  ;;  %v330_v34 = vpop.permute.xlu1 %329 }
 0x3ab   :  { %1402 = vmatpush.xpose.msk.msrb.mxu3 %vm279_vm14, %v340_v19  ;;  %1419 = vmatpush.xpose.msk.msrb.mxu1 %vm279_vm14, %v460_v29 }
 0x3ae   :  { %1420 = vmatmul.msk.f32.vlgmr.msrb.gmra.mxu1 %vm279_vm14, %v452_v30 }
 0x3af   :  { %1403 = vmatpush.xpose.msk.msrb.mxu3 %vm279_vm14, %v338_v20 }
 0x3b1   :  { %v454_v36 = vpop.permute.xlu2 %453 }
 0x3b2   :  { %v336_v35 = vpop.permute.xlu1 %335  ;;  %1399 = vmatmul.msk.f32.gmra.mxu3 %vm279_vm14, %v1794_v15 }
 0x3b6   :  { %1421 = vmatmul.msk.f32.gmra.mxu1 %vm279_vm14, %v454_v36 }
 0x3ba   :  { %v401_v37 = vpop.permute.xlu1 %400  ;;  %1404 = vmatmul.msk.f32.vlgmr.msrb.gmra.mxu3 %vm279_vm14, %v330_v34 }
 0x3bb   :  { %1410 = vmatpush.xpose.msk.msrb.mxu0 %vm279_vm14, %v401_v37 }
 0x3bf   :  { %1411 = vmatpush.xpose.msk.msrb.mxu0 %vm279_vm14, %v399_v26 }
 0x3c2   :  { %v391_v38 = vpop.permute.xlu1 %390  ;;  %1405 = vmatmul.msk.f32.gmra.mxu3 %vm279_vm14, %v332_v21 }
 0x3c3   :  { %1412 = vmatmul.msk.f32.vlgmr.msrb.gmra.mxu0 %vm279_vm14, %v391_v38 }
 0x3ca   :  { %v393_v39 = vpop.permute.xlu1 %392  ;;  %1406 = vmatmul.msk.f32.gmra.mxu3 %vm279_vm14, %v334_v22  ;;  %v512_v22 = vld [vmem:[%s2258_s1 + $0xb8] sm:$0xff] }
 0x3cb   :  { %1413 = vmatmul.msk.f32.gmra.mxu0 %vm279_vm14, %v393_v39  ;;  %v520_v39 = vld [vmem:[%s2258_s1 + $0xf8] sm:$0xff] }
 0x3d2   :  { %v395_v14 = vpop.permute.xlu1 %394  ;;  %1407 = vmatmul.msk.f32.gmra.mxu3 %vm279_vm14, %v336_v35  ;;  %v514_v35 = vld [vmem:[%s2258_s1 + $0xc8] sm:$0xff] }
 0x3d3   :  { %1414 = vmatmul.msk.f32.gmra.mxu0 %vm279_vm14, %v395_v14 }
 0x3da   :  { %v397_v40 = vpop.permute.xlu1 %396 }
 0x3db   :  { %1415 = vmatmul.msk.f32.gmra.mxu0 %vm279_vm14, %v397_v40 }
 0x3e2   :  { %v456_v41 = vpop.permute.xlu1 %455 }
 0x3e3   :  { %1422 = vmatmul.msk.f32.gmra.mxu1 %vm279_vm14, %v456_v41 }
 0x425   :  { %v1841_v42 = vpop.f32.mrf.mxu3  ;;  %v317_v21 = vpop.f32.mrf.mxu2 }
 0x426   :  { %v1887_v24 = vadd.f32 %v512_v22, %v317_v21  ;;  %v1902_v33 = vadd.f32 %v513_v28, %v1841_v42  ;;  %v521_v42 = vld [vmem:[%s2258_s1 + $0x100] sm:$0xff] }
 0x428   :  { %v544_v26 = vsel %vm19_vm0, %v1887_v24, -inf  ;;  %v547_v34 = vsel %vm19_vm0, %v1902_v33, -inf }
 0x42b   :  { %v500_v31 = vpop.f32.mrf.mxu1 }
 0x42c   :  { %v1904_v29 = vadd.f32 %v524_v32, %v500_v31 }
 0x42d   :  { %v1843_v43 = vpop.f32.mrf.mxu3 }
 0x42e   :  { %v580_v30 = vsel %vm19_vm0, %v1904_v29, -inf  ;;  %v1916_v36 = vadd.f32 %v514_v35, %v1843_v43 }
 0x430   :  { %v550_v38 = vsel %vm19_vm0, %v1916_v36, -inf }
 0x435   :  { %v1845_v44 = vpop.f32.mrf.mxu3 }
 0x43d   :  { %v378_v46 = vpop.f32.mrf.mxu3 }
 0x43e   :  { %v532_v47 = vadd.f32 %v516_v45, %v378_v46 }
 0x440   :  { %v556_v48 = vsel %vm19_vm0, %v532_v47, -inf  ;;  %v439_v37 = vpop.f32.mrf.mxu0 }
 0x441   :  { %557 = vmax.xlane.f32.xlu0 %v556_v48  ;;  %v1923_v14 = vadd.f32 %v520_v39, %v439_v37 }
 0x443   :  { %v568_v41 = vsel %vm19_vm0, %v1923_v14, -inf }
 0x445   :  { %v381_v50 = vpop.f32.mrf.mxu3 }
 0x446   :  { %v533_v51 = vadd.f32 %v517_v49, %v381_v50  ;;  %v503_v50 = vpop.f32.mrf.mxu1 }
 0x448   :  { %v559_v52 = vsel %vm19_vm0, %v533_v51, -inf  ;;  %v442_v40 = vpop.f32.mrf.mxu0 }
 0x449   :  { %560 = vmax.xlane.f32.xlu2 %v559_v52  ;;  %v1930_v43 = vadd.f32 %v521_v42, %v442_v40  ;;  %v523_v40 = vld [vmem:[%s2258_s1 + $0x110] sm:$0xff] }
 0x44b   :  { %v571_v45 = vsel %vm19_vm0, %v1930_v43, -inf }
 0x44d   :  { %v384_v54 = vpop.f32.mrf.mxu3 }
 0x44e   :  { %v534_v55 = vadd.f32 %v518_v53, %v384_v54  ;;  %v515_v53 = vld [vmem:[%s2258_s1 + $0xd0] sm:$0xff] }
 0x44f   :  { %v1950_v54 = vadd.f32 %v515_v53, %v1845_v44 }
 0x450   :  { %v562_v56 = vsel %vm19_vm0, %v534_v55, -inf  ;;  %v445_v46 = vpop.f32.mrf.mxu0 }
 0x451   :  { %563 = vmax.xlane.f32.xlu1 %v562_v56  ;;  %v553_v56 = vsel %vm19_vm0, %v1950_v54, -inf }
 0x455   :  { %457 = vrot.lane.b32.xlu0 %v1794_v15, %s1637_s20  ;;  %v387_v58 = vpop.f32.mrf.mxu3 }
 0x456   :  { %v535_v59 = vadd.f32 %v519_v57, %v387_v58  ;;  %v526_v58 = vld [vmem:[%s2258_s1 + $0x128] sm:$0xff] }
 0x458   :  { %v565_v60 = vsel %vm19_vm0, %v535_v59, -inf  ;;  %v448_v39 = vpop.f32.mrf.mxu0 }
 0x459   :  { %566 = vmax.xlane.f32.xlu2 %v565_v60 }
 0x45d   :  { %1488 = vrot.lane.b32.xlu0 %v1867_v61, %s1639_s30 }
 0x460   :  { %v506_v57 = vpop.f32.mrf.mxu1 }
 0x4b4   :  { %v558_v62 = vpop.xlane.xlu0 %557 }
 0x4b5   :  { %v596_v63 = vsub.f32 %v532_v47, %v558_v62  ;;  %v522_v47 = vld [vmem:[%s2258_s1 + $0x108] sm:$0xff] }
 0x4b6   :  { %v1937_v48 = vadd.f32 %v522_v47, %v445_v46 }
 0x4b7   :  { %v616_v0 = vmul.f32 1.442695, %v596_v63 }
 0x4b8   :  { %v574_v49 = vsel %vm19_vm0, %v1937_v48, -inf }
 0x4b9   :  { %1540 = vpow2.f32 %v616_v0 }
 0x4bc   :  { %v561_v1 = vpop.xlane.xlu2 %560 }
 0x4bd   :  { %v597_v2 = vsub.f32 %v533_v51, %v561_v1  ;;  %v525_v51 = vld [vmem:[%s2258_s1 + $0x120] sm:$0xff] }
 0x4be   :  { %v1944_v52 = vadd.f32 %v525_v51, %v503_v50  ;;  %v1993_v50 = vadd.f32 %v523_v40, %v448_v39 }
 0x4bf   :  { %v1871_v3 = vpop.eup %1540  ;;  %v618_v4 = vmul.f32 1.442695, %v597_v2 }
 0x4c0   :  { %v652_v5 = vsel %vm19_vm0, %v1871_v3, 0.0 }
 0x4c1   :  { %1542 = vpow2.f32 %v618_v4  ;;  %653 = vadd.xlane.f32.xlu2 %v652_v5 }
 0x4c4   :  { %v564_v6 = vpop.xlane.xlu1 %563 }
 0x4c5   :  { %v598_v7 = vsub.f32 %v534_v55, %v564_v6  ;;  %v583_v55 = vsel %vm19_vm0, %v1944_v52, -inf }
 0x4c7   :  { %v1875_v9 = vpop.eup %1542  ;;  %v620_v10 = vmul.f32 1.442695, %v598_v7  ;;  %v458_v11 = vpop.permute.xlu0 %457 }
 0x4c8   :  { %1423 = vmatmul.msk.f32.gmra.mxu1 %vm279_vm14, %v458_v11  ;;  %v655_v12 = vsel %vm19_vm0, %v1875_v9, 0.0 }
 0x4c9   :  { %1544 = vpow2.f32 %v620_v10  ;;  %656 = vadd.xlane.f32.xlu1 %v655_v12 }
 0x4cc   :  { %v567_v13 = vpop.xlane.xlu2 %566 }
 0x4cd   :  { %v599_v15 = vsub.f32 %v535_v59, %v567_v13  ;;  %v1959_v59 = vadd.f32 %v526_v58, %v506_v57 }
 0x4cf   :  { %v1880_v16 = vpop.eup %1544  ;;  %v622_v17 = vmul.f32 1.442695, %v599_v15  ;;  %v1489_v18 = vpop.permute.xlu0 %1488  ;;  %v586_v60 = vsel %vm19_vm0, %v1959_v59, -inf }
 0x4d0   :  { %v1490_v19 = vunpack.i.l.bf16 %v1489_v18  ;;  %v658_v20 = vsel %vm19_vm0, %v1880_v16, 0.0  ;;  %v1491_v23 = vunpack.i.h.bf16 %v1489_v18 }
 0x4d1   :  { %1546 = vpow2.f32 %v622_v17  ;;  %659 = vadd.xlane.f32.xlu2 %v658_v20 }
 0x4d2   :  { %1021 = vmatpush.msra.mxu3 %v1490_v19 }
 0x4d4   :  { %1022 = vmatpush.msra.mxu3 %v1491_v23 }
 0x4d7   :  { %v1889_v25 = vpop.eup %1546 }
 0x4d8   :  { %v661_v27 = vsel %vm19_vm0, %v1889_v25, 0.0 }
 0x4d9   :  { %545 = vmax.xlane.f32.xlu2 %v544_v26  ;;  %662 = vadd.xlane.f32.xlu0 %v661_v27 }
 0x4e1   :  { %548 = vmax.xlane.f32.xlu2 %v547_v34  ;;  %581 = vmax.xlane.f32.xlu0 %v580_v30 }
 0x4e2   :  { %1493 = vrot.lane.b32.xlu1 %v1776_v8, %s1639_s30 }
 0x4e9   :  { %551 = vmax.xlane.f32.xlu2 %v550_v38 }
 0x4f1   :  { %569 = vmax.xlane.f32.xlu2 %v568_v41 }
 0x4f9   :  { %572 = vmax.xlane.f32.xlu2 %v571_v45 }
 0x501   :  { %575 = vmax.xlane.f32.xlu2 %v574_v49 }
 0x509   :  { %584 = vmax.xlane.f32.xlu2 %v583_v55 }
 0x50c   :  { %554 = vmax.xlane.f32.xlu1 %v553_v56 }
 0x514   :  { %587 = vmax.xlane.f32.xlu1 %v586_v60  ;;  %v577_v60 = vsel %vm19_vm0, %v1993_v50, -inf }
 0x52d   :  { %1503 = vrot.lane.b32.xlu1 %v1776_v8, %s1640_s22 }
 0x534   :  { %v654_v44 = vpop.xlane.xlu2 %653 }
 0x535   :  { %1508 = vrot.lane.b32.xlu1 %v1867_v61, %s1641_s23  ;;  %1548 = vrcp.f32 %v654_v44  ;;  %v759_v17 = vand.u32 2147483648, %v654_v44  ;;  %vm753_vm1 = vweird.f32 %v654_v44  ;;  %v757_v19 = vand.u32 2147483647, %v654_v44 }
 0x537   :  { %v760_v23 = vor.u32 1.1754944e-38, %v759_v17  ;;  %vm758_vm3 = vcmp.eq.f32.partialorder %v757_v19, 8.507059e+37 }
 0x53b   :  { %v1549_v63 = vpop.eup %1548 }
 0x53c   :  { %v657_v62 = vpop.xlane.xlu1 %656  ;;  %v749_v0 = vmul.f32 %v1549_v63, %v654_v44  ;;  %vm754_vm15 = vweird.f32 %v1549_v63 }
 0x53d   :  { %1550 = vrcp.f32 %v657_v62  ;;  %vm755_vm2 = vmor %vm753_vm1, %vm754_vm15  ;;  %vm768_vm5 = vweird.f32 %v657_v62  ;;  %v774_v37 = vand.u32 2147483648, %v657_v62 }
 0x53e   :  { %v750_v2 = vsub.f32 1.0, %v749_v0 }
 0x53f   :  { %v775_v51 = vor.u32 1.1754944e-38, %v774_v37 }
 0x540   :  { %v751_v5 = vmul.f32 %v1549_v63, %v750_v2 }
 0x542   :  { %v752_v12 = vadd.f32 %v1549_v63, %v751_v5 }
 0x543   :  { %v1551_v4 = vpop.eup %1550 }
 0x544   :  { %v1967_v1 = vpop.xlane.xlu2 %659  ;;  %v764_v6 = vmul.f32 %v1551_v4, %v657_v62  ;;  %v756_v20 = vsel %vm755_vm2, %v1549_v63, %v752_v12  ;;  %vm769_vm4 = vweird.f32 %v1551_v4 }
 0x545   :  { %1552 = vrcp.f32 %v1967_v1  ;;  %v761_v26 = vsel %vm758_vm3, %v760_v23, %v756_v20  ;;  %vm770_vm6 = vmor %vm768_vm5, %vm769_vm4  ;;  %v789_v58 = vand.u32 2147483648, %v1967_v1  ;;  %vm783_vm9 = vweird.f32 %v1967_v1  ;;  %v509_v17 = vpop.f32.mrf.mxu1 }
 0x546   :  { %v765_v13 = vsub.f32 1.0, %v764_v6  ;;  %v762_v45 = vmul.f32 %v1871_v3, %v761_v26  ;;  %v787_v0 = vand.u32 2147483647, %v1967_v1 }
 0x547   :  { %v790_v5 = vor.u32 1.1754944e-38, %v789_v58 }
 0x548   :  { %v766_v21 = vmul.f32 %v1551_v4, %v765_v13  ;;  %vm788_vm11 = vcmp.eq.f32.partialorder %v787_v0, 8.507059e+37 }
 0x54a   :  { %v767_v30 = vadd.f32 %v1551_v4, %v766_v21 }
 0x54b   :  { %v1973_v15 = vpop.eup %1552 }
 0x54c   :  { %v546_v7 = vpop.xlane.xlu2 %545  ;;  %v1970_v10 = vpop.xlane.xlu0 %662  ;;  %v779_v22 = vmul.f32 %v1973_v15, %v1967_v1  ;;  %v771_v49 = vsel %vm770_vm6, %v1551_v4, %v767_v30  ;;  %vm784_vm8 = vweird.f32 %v1973_v15 }
 0x54d   :  { %v592_v11 = vsub.f32 %v1887_v24, %v546_v7  ;;  %1554 = vrcp.f32 %v1970_v10  ;;  %vm785_vm10 = vmor %vm783_vm9, %vm784_vm8  ;;  %v804_v1 = vand.u32 2147483648, %v1970_v10  ;;  %vm798_vm13 = vweird.f32 %v1970_v10 }
 0x54e   :  { %v780_v32 = vsub.f32 1.0, %v779_v22  ;;  %v802_v13 = vand.u32 2147483647, %v1970_v10 }
 0x54f   :  { %v608_v18 = vmul.f32 1.442695, %v592_v11  ;;  %v805_v20 = vor.u32 1.1754944e-38, %v804_v1 }
 0x550   :  { %v781_v46 = vmul.f32 %v1973_v15, %v780_v32  ;;  %vm803_vm1 = vcmp.eq.f32.partialorder %v802_v13, 8.507059e+37 }
 0x551   :  { %1556 = vpow2.f32 %v608_v18  ;;  %v527_v18 = vld [vmem:[%s2258_s1 + $0x130] sm:$0xff] }
 0x552   :  { %v782_v57 = vadd.f32 %v1973_v15, %v781_v46  ;;  %v2026_v21 = vadd.f32 %v527_v18, %v509_v17 }
 0x553   :  { %v1978_v31 = vpop.eup %1554 }
 0x554   :  { %v1494_v24 = vpop.permute.xlu1 %1493  ;;  %v549_v28 = vpop.xlane.xlu2 %548  ;;  %v794_v47 = vmul.f32 %v1978_v31, %v1970_v10  ;;  %v786_v4 = vsel %vm785_vm10, %v1973_v15, %v782_v57  ;;  %vm799_vm12 = vweird.f32 %v1978_v31  ;;  %v589_v23 = vsel %vm19_vm0, %v2026_v21, -inf }
 0x555   :  { %v1495_v27 = vunpack.i.l.bf16 %v1494_v24  ;;  %v593_v34 = vsub.f32 %v1902_v33, %v549_v28  ;;  %v1496_v38 = vunpack.i.h.bf16 %v1494_v24  ;;  %v772_v33 = vand.u32 2147483647, %v657_v62  ;;  %vm800_vm15 = vmor %vm798_vm13, %vm799_vm12 }
 0x556   :  { %v795_v3 = vsub.f32 1.0, %v794_v47  ;;  %v791_v7 = vsel %vm788_vm11, %v790_v5, %v786_v4 }
 0x557   :  { %v1981_v35 = vpop.eup %1556  ;;  %1023 = vmatpush.msra.mxu3 %v1495_v27  ;;  %v610_v41 = vmul.f32 1.442695, %v593_v34  ;;  %vm773_vm7 = vcmp.eq.f32.partialorder %v772_v33, 8.507059e+37  ;;  %v792_v12 = vmul.f32 %v1880_v16, %v791_v7 }
 0x558   :  { %v640_v42 = vsel %vm19_vm0, %v1981_v35, 0.0  ;;  %v776_v55 = vsel %vm773_vm7, %v775_v51, %v771_v49  ;;  %v796_v2 = vmul.f32 %v1978_v31, %v795_v3 }
 0x559   :  { %1024 = vmatpush.msra.mxu3 %v1496_v38  ;;  %641 = vadd.xlane.f32.xlu0 %v640_v42  ;;  %1558 = vpow2.f32 %v610_v41  ;;  %v777_v63 = vmul.f32 %v1875_v9, %v776_v55  ;;  %v582_v38 = vpop.xlane.xlu0 %581 }
 0x55a   :  { %1428 = vmatmul.msk.f32.vlgmr.msra.gmra.mxu3 %vm19_vm0, %v762_v45  ;;  %v797_v9 = vadd.f32 %v1978_v31, %v796_v2  ;;  %v604_v41 = vsub.f32 %v1904_v29, %v582_v38 }
 0x55c   :  { %v552_v53 = vpop.xlane.xlu2 %551  ;;  %v801_v19 = vsel %vm800_vm15, %v1978_v31, %v797_v9  ;;  %v632_v45 = vmul.f32 1.442695, %v604_v41 }
 0x55d   :  { %v594_v56 = vsub.f32 %v1916_v36, %v552_v53  ;;  %v806_v10 = vsel %vm803_vm1, %v805_v20, %v801_v19 }
 0x55e   :  { %v807_v22 = vmul.f32 %v1889_v25, %v806_v10 }
 0x55f   :  { %v2001_v44 = vpop.eup %1558  ;;  %v612_v62 = vmul.f32 1.442695, %v594_v56 }
 0x560   :  { %v643_v36 = vsel %vm19_vm0, %v2001_v44, 0.0 }
 0x561   :  { %578 = vmax.xlane.f32.xlu0 %v577_v60  ;;  %1560 = vpow2.f32 %v612_v62  ;;  %644 = vadd.xlane.f32.xlu2 %v643_v36 }
 0x562   :  { %1429 = vmatmul.msk.f32.gmra.mxu3 %vm19_vm0, %v777_v63 }
 0x564   :  { %v570_v6 = vpop.xlane.xlu2 %569 }
 0x567   :  { %v2014_v11 = vpop.eup %1560 }
 0x568   :  { %v646_v15 = vsel %vm19_vm0, %v2014_v11, 0.0 }
 0x569   :  { %647 = vadd.xlane.f32.xlu2 %v646_v15 }
 0x56a   :  { %1430 = vmatmul.msk.f32.gmra.mxu3 %vm19_vm0, %v792_v12 }
 0x56c   :  { %v573_v16 = vpop.xlane.xlu2 %572 }
 0x56d   :  { %v601_v34 = vsub.f32 %v1930_v43, %v573_v16  ;;  %v600_v43 = vsub.f32 %v1923_v14, %v570_v6 }
 0x56f   :  { %v626_v37 = vmul.f32 1.442695, %v601_v34  ;;  %v624_v46 = vmul.f32 1.442695, %v600_v43 }
 0x571   :  { %590 = vmax.xlane.f32.xlu2 %v589_v23 }
 0x572   :  { %1431 = vmatmul.msk.f32.gmra.mxu3 %vm19_vm0, %v807_v22 }
 0x574   :  { %v576_v24 = vpop.xlane.xlu2 %575 }
 0x575   :  { %1498 = vrot.lane.b32.xlu0 %v1867_v61, %s1640_s22  ;;  %v602_v26 = vsub.f32 %v1937_v48, %v576_v24  ;;  %s1372_s22 = sshll.u32 %s2259_s2, 4  ;;  %s1373_s22 = int_to_ptr.hbm [resolvable:$true] %s1372_s22 }
 0x577   :  { %v628_v27 = vmul.f32 1.442695, %v602_v26 }
 0x579   :  { %1562 = vpow2.f32 %v628_v27 }
 0x57f   :  { %v555_v28 = vpop.xlane.xlu1 %554  ;;  %v2035_v31 = vpop.eup %1562 }
 0x580   :  { %v595_v32 = vsub.f32 %v1950_v54, %v555_v28  ;;  %v670_v25 = vsel %vm19_vm0, %v2035_v31, 0.0 }
 0x581   :  { %671 = vadd.xlane.f32.xlu1 %v670_v25 }
 0x582   :  { %v614_v30 = vmul.f32 1.442695, %v595_v32 }
 0x584   :  { %1564 = vpow2.f32 %v614_v30 }
 0x585   :  { %1566 = vpow2.f32 %v626_v37 }
 0x587   :  { %v588_v39 = vpop.xlane.xlu1 %587 }
 0x588   :  { %v606_v48 = vsub.f32 %v1959_v59, %v588_v39  ;;  %v585_v59 = vpop.xlane.xlu2 %584 }
 0x589   :  { %v605_v51 = vsub.f32 %v1944_v52, %v585_v59  ;;  %v929_v52 = vld [vmem:[%s2258_s1 + $0x48] sm:$0xff] }
 0x58a   :  { %v2042_v40 = vpop.eup %1564  ;;  %v636_v42 = vmul.f32 1.442695, %v606_v48  ;;  %1065 = vmatpush.msra.mxu0 %v929_v52 }
 0x58b   :  { %v649_v54 = vsel %vm19_vm0, %v2042_v40, 0.0  ;;  %v2048_v33 = vpop.eup %1566  ;;  %v634_v53 = vmul.f32 1.442695, %v605_v51 }
 0x58c   :  { %1568 = vpow2.f32 %v636_v42  ;;  %650 = vadd.xlane.f32.xlu2 %v649_v54  ;;  %v667_v29 = vsel %vm19_vm0, %v2048_v33, 0.0 }
 0x58d   :  { %1570 = vpow2.f32 %v632_v45 }
 0x58e   :  { %1572 = vpow2.f32 %v624_v46 }
 0x58f   :  { %1574 = vpow2.f32 %v634_v53 }
 0x592   :  { %v2050_v47 = vpop.eup %1568 }
 0x593   :  { %v682_v49 = vsel %vm19_vm0, %v2050_v47, 0.0  ;;  %v2057_v14 = vpop.eup %1570 }
 0x594   :  { %668 = vadd.xlane.f32.xlu2 %v667_v29  ;;  %683 = vadd.xlane.f32.xlu1 %v682_v49  ;;  %v2059_v55 = vpop.eup %1572  ;;  %v676_v3 = vsel %vm19_vm0, %v2057_v14, 0.0 }
 0x595   :  { %v664_v56 = vsel %vm19_vm0, %v2059_v55, 0.0  ;;  %v2065_v57 = vpop.eup %1574 }
 0x596   :  { %v679_v58 = vsel %vm19_vm0, %v2065_v57, 0.0 }
 0x59c   :  { %677 = vadd.xlane.f32.xlu2 %v676_v3 }
 0x59f   :  { %665 = vadd.xlane.f32.xlu0 %v664_v56  ;;  %v1504_v12 = vpop.permute.xlu1 %1503 }
 0x5a0   :  { %v1506_v48 = vunpack.i.h.bf16 %v1504_v12 }
 0x5a7   :  { %680 = vadd.xlane.f32.xlu0 %v679_v58  ;;  %v1509_v30 = vpop.permute.xlu1 %1508 }
 0x5a8   :  { %v1510_v45 = vunpack.i.l.bf16 %v1509_v30  ;;  %v1511_v49 = vunpack.i.h.bf16 %v1509_v30 }
 0x5ad   :  { %1523 = vrot.lane.b32.xlu1 %v1776_v8, %s1642_s28 }
 0x5b4   :  { %1513 = vrot.lane.b32.xlu2 %v1776_v8, %s1641_s23  ;;  %s1645_s23 = smov 8  }
 0x5bb   :  { %1518 = vrot.lane.b32.xlu0 %v1867_v61, %s1642_s28 }
 0x5cc   :  { %v642_v60 = vpop.xlane.xlu0 %641 }
 0x5cd   :  { %1576 = vrcp.f32 %v642_v60  ;;  %v699_v20 = vand.u32 2147483648, %v642_v60  ;;  %vm693_vm3 = vweird.f32 %v642_v60  ;;  %v697_v10 = vand.u32 2147483647, %v642_v60 }
 0x5cf   :  { %v700_v32 = vor.u32 1.1754944e-38, %v699_v20  ;;  %vm698_vm5 = vcmp.eq.f32.partialorder %v697_v10, 8.507059e+37 }
 0x5d3   :  { %v1577_v36 = vpop.eup %1576 }
 0x5d4   :  { %v579_v62 = vpop.xlane.xlu0 %578  ;;  %v2077_v0 = vpop.xlane.xlu2 %644  ;;  %v689_v4 = vmul.f32 %v1577_v36, %v642_v60  ;;  %vm694_vm2 = vweird.f32 %v1577_v36 }
 0x5d5   :  { %v603_v63 = vsub.f32 %v1993_v50, %v579_v62  ;;  %1578 = vrcp.f32 %v2077_v0  ;;  %vm695_vm4 = vmor %vm693_vm3, %vm694_vm2  ;;  %v714_v41 = vand.u32 2147483648, %v2077_v0  ;;  %vm708_vm7 = vweird.f32 %v2077_v0 }
 0x5d6   :  { %v690_v8 = vsub.f32 1.0, %v689_v4  ;;  %v712_v54 = vand.u32 2147483647, %v2077_v0 }
 0x5d7   :  { %v630_v2 = vmul.f32 1.442695, %v603_v63  ;;  %v715_v51 = vor.u32 1.1754944e-38, %v714_v41 }
 0x5d8   :  { %v691_v9 = vmul.f32 %v1577_v36, %v690_v8  ;;  %vm713_vm9 = vcmp.eq.f32.partialorder %v712_v54, 8.507059e+37 }
 0x5d9   :  { %1580 = vpow2.f32 %v630_v2 }
 0x5da   :  { %v692_v13 = vadd.f32 %v1577_v36, %v691_v9 }
 0x5db   :  { %v2082_v6 = vpop.eup %1578 }
 0x5dc   :  { %v2080_v61 = vpop.xlane.xlu2 %647  ;;  %v704_v1 = vmul.f32 %v2082_v6, %v2077_v0  ;;  %v696_v26 = vsel %vm695_vm4, %v1577_v36, %v692_v13  ;;  %vm709_vm6 = vweird.f32 %v2082_v6 }
 0x5dd   :  { %v1026_v5 = vpop.f32.mrf.mxu3  ;;  %1582 = vrcp.f32 %v2080_v61  ;;  %v701_v34 = vsel %vm698_vm5, %v700_v32, %v696_v26  ;;  %vm710_vm8 = vmor %vm708_vm7, %vm709_vm6  ;;  %v729_v56 = vand.u32 2147483648, %v2080_v61  ;;  %vm723_vm11 = vweird.f32 %v2080_v61 }
 0x5de   :  { %1432 = vmatmul.msk.f32.vlgmr.msra.gmra.mxu0 %vm279_vm14, %v1026_v5  ;;  %v705_v15 = vsub.f32 1.0, %v704_v1  ;;  %v702_v42 = vmul.f32 %v1981_v35, %v701_v34  ;;  %v727_v52 = vand.u32 2147483647, %v2080_v61 }
 0x5df   :  { %v2085_v7 = vpop.eup %1580  ;;  %v730_v62 = vor.u32 1.1754944e-38, %v729_v56 }
 0x5e0   :  { %v673_v50 = vsel %vm19_vm0, %v2085_v7, 0.0  ;;  %v706_v27 = vmul.f32 %v2082_v6, %v705_v15  ;;  %vm728_vm13 = vcmp.eq.f32.partialorder %v727_v52, 8.507059e+37 }
 0x5e1   :  { %674 = vadd.xlane.f32.xlu2 %v673_v50 }
 0x5e2   :  { %v707_v39 = vadd.f32 %v2082_v6, %v706_v27 }
 0x5e3   :  { %v2092_v19 = vpop.eup %1582 }
 0x5e4   :  { %v591_v17 = vpop.xlane.xlu2 %590  ;;  %v719_v28 = vmul.f32 %v2092_v19, %v2080_v61  ;;  %v711_v29 = vsel %vm710_vm8, %v2082_v6, %v707_v39  ;;  %vm724_vm10 = vweird.f32 %v2092_v19 }
 0x5e5   :  { %v1029_v18 = vpop.f32.mrf.mxu3  ;;  %v607_v16 = vsub.f32 %v2026_v21, %v591_v17  ;;  %v1505_v21 = vunpack.i.l.bf16 %v1504_v12  ;;  %v716_v35 = vsel %vm713_vm9, %v715_v51, %v711_v29  ;;  %vm725_vm12 = vmor %vm723_vm11, %vm724_vm10 }
 0x5e6   :  { %1433 = vmatmul.msk.f32.gmra.mxu0 %vm279_vm14, %v1029_v18  ;;  %v720_v37 = vsub.f32 1.0, %v719_v28  ;;  %v717_v58 = vmul.f32 %v2001_v44, %v716_v35 }
 0x5e7   :  { %v1499_v22 = vpop.permute.xlu0 %1498  ;;  %v638_v23 = vmul.f32 1.442695, %v607_v16 }
 0x5e8   :  { %v1500_v24 = vunpack.i.l.bf16 %v1499_v22  ;;  %v1501_v25 = vunpack.i.h.bf16 %v1499_v22  ;;  %v721_v46 = vmul.f32 %v2092_v19, %v720_v37 }
 0x5e9   :  { %1584 = vpow2.f32 %v638_v23 }
 0x5ea   :  { %968 = vmatpush.msra.mxu2 %v1500_v24  ;;  %v722_v3 = vadd.f32 %v2092_v19, %v721_v46 }
 0x5ec   :  { %969 = vmatpush.msra.mxu2 %v1501_v25  ;;  %v726_v60 = vsel %vm725_vm12, %v2092_v19, %v722_v3 }
 0x5ed   :  { %v1032_v38 = vpop.f32.mrf.mxu3  ;;  %v731_v63 = vsel %vm728_vm13, %v730_v62, %v726_v60 }
 0x5ee   :  { %970 = vmatpush.msra.mxu2 %v1505_v21  ;;  %1434 = vmatmul.msk.f32.gmra.mxu0 %vm279_vm14, %v1032_v38  ;;  %v732_v36 = vmul.f32 %v2014_v11, %v731_v63 }
 0x5ef   :  { %v2106_v43 = vpop.eup %1584 }
 0x5f0   :  { %971 = vmatpush.msra.mxu2 %v1506_v48  ;;  %v685_v59 = vsel %vm19_vm0, %v2106_v43, 0.0 }
 0x5f1   :  { %1424 = vmatmul.msk.f32.vlgmr.msra.gmra.mxu2 %vm19_vm0, %v702_v42  ;;  %686 = vadd.xlane.f32.xlu0 %v685_v59 }
 0x5f2   :  { %1156 = vmatpush.msrb.mxu2 %v1510_v45 }
 0x5f4   :  { %1157 = vmatpush.msrb.mxu2 %v1511_v49  ;;  %v2129_v12 = vpop.xlane.xlu1 %671 }
 0x5f5   :  { %v1035_v53 = vpop.f32.mrf.mxu3  ;;  %v849_v60 = vand.u32 2147483648, %v2129_v12 }
 0x5f6   :  { %1435 = vmatmul.msk.f32.gmra.mxu0 %vm279_vm14, %v1035_v53 }
 0x5f9   :  { %1425 = vmatmul.msk.f32.gmra.mxu2 %vm19_vm0, %v717_v58 }
 0x5ff   :  { %v651_v0 = vpop.xlane.xlu2 %650 }
 0x600   :  { %1586 = vrcp.f32 %v651_v0  ;;  %v744_v5 = vand.u32 2147483648, %v651_v0  ;;  %v742_v6 = vand.u32 2147483647, %v651_v0  ;;  %vm738_vm1 = vweird.f32 %v651_v0 }
 0x601   :  { %1426 = vmatmul.msk.f32.gmra.mxu2 %vm19_vm0, %v732_v36 }
 0x602   :  { %v745_v9 = vor.u32 1.1754944e-38, %v744_v5  ;;  %vm743_vm3 = vcmp.eq.f32.partialorder %v742_v6, 8.507059e+37 }
 0x606   :  { %v1587_v2 = vpop.eup %1586 }
 0x607   :  { %v734_v4 = vmul.f32 %v1587_v2, %v651_v0  ;;  %v2124_v8 = vpop.xlane.xlu2 %668  ;;  %vm739_vm15 = vweird.f32 %v1587_v2  ;;  %v2147_v54 = vpop.xlane.xlu1 %683 }
 0x608   :  { %1588 = vrcp.f32 %v2124_v8  ;;  %vm740_vm2 = vmor %vm738_vm1, %vm739_vm15  ;;  %v834_v45 = vand.u32 2147483648, %v2124_v8  ;;  %vm828_vm9 = vweird.f32 %v2124_v8  ;;  %v832_v51 = vand.u32 2147483647, %v2124_v8 }
 0x609   :  { %v735_v44 = vsub.f32 1.0, %v734_v4  ;;  %vm843_vm15 = vweird.f32 %v2129_v12  ;;  %v847_v4 = vand.u32 2147483647, %v2129_v12 }
 0x60a   :  { %v835_v3 = vor.u32 1.1754944e-38, %v834_v45  ;;  %vm833_vm11 = vcmp.eq.f32.partialorder %v832_v51, 8.507059e+37 }
 0x60b   :  { %v736_v61 = vmul.f32 %v1587_v2, %v735_v44 }
 0x60d   :  { %v737_v50 = vadd.f32 %v1587_v2, %v736_v61  ;;  %v931_v61 = vld [vmem:[%s2258_s1 + $0x58] sm:$0xff] }
 0x60e   :  { %v1589_v15 = vpop.eup %1588 }
 0x60f   :  { %v2127_v1 = vpop.xlane.xlu2 %677  ;;  %v741_v11 = vsel %vm740_vm2, %v1587_v2, %v737_v50  ;;  %v824_v19 = vmul.f32 %v1589_v15, %v2124_v8  ;;  %vm829_vm8 = vweird.f32 %v1589_v15  ;;  %v850_v50 = vor.u32 1.1754944e-38, %v849_v60 }
 0x610   :  { %v746_v13 = vsel %vm743_vm3, %v745_v9, %v741_v11  ;;  %vm830_vm10 = vmor %vm828_vm9, %vm829_vm8  ;;  %v879_v36 = vand.u32 2147483648, %v2127_v1  ;;  %vm873_vm1 = vweird.f32 %v2127_v1  ;;  %v877_v8 = vand.u32 2147483647, %v2127_v1 }
 0x611   :  { %v747_v18 = vmul.f32 %v2042_v40, %v746_v13  ;;  %v825_v22 = vsub.f32 1.0, %v824_v19 }
 0x612   :  { %v666_v17 = vpop.xlane.xlu0 %665  ;;  %v880_v13 = vor.u32 1.1754944e-38, %v879_v36 }
 0x613   :  { %1590 = vrcp.f32 %v666_v17  ;;  %1427 = vmatmul.msk.f32.gmra.mxu2 %vm19_vm0, %v747_v18  ;;  %v826_v25 = vmul.f32 %v1589_v15, %v825_v22  ;;  %v819_v21 = vand.u32 2147483648, %v666_v17  ;;  %v817_v30 = vand.u32 2147483647, %v666_v17 }
 0x614   :  { %1592 = vrcp.f32 %v2129_v12  ;;  %vm813_vm5 = vweird.f32 %v666_v17 }
 0x615   :  { %1594 = vrcp.f32 %v2127_v1  ;;  %v820_v48 = vor.u32 1.1754944e-38, %v819_v21  ;;  %vm818_vm7 = vcmp.eq.f32.partialorder %v817_v30, 8.507059e+37  ;;  %v827_v42 = vadd.f32 %v1589_v15, %v826_v25 }
 0x617   :  { %v1514_v20 = vpop.permute.xlu2 %1513  ;;  %v831_v53 = vsel %vm830_vm10, %v1589_v15, %v827_v42 }
 0x618   :  { %v1515_v16 = vunpack.i.l.bf16 %v1514_v20  ;;  %v1516_v26 = vunpack.i.h.bf16 %v1514_v20  ;;  %v836_v52 = vsel %vm833_vm11, %v835_v3, %v831_v53  ;;  %vm903_vm11 = vweird.f32 %v2147_v54 }
 0x619   :  { %v1591_v10 = vpop.eup %1590  ;;  %v837_v2 = vmul.f32 %v2048_v33, %v836_v52 }
 0x61a   :  { %v2136_v23 = vpop.eup %1592  ;;  %v809_v24 = vmul.f32 %v1591_v10, %v666_v17  ;;  %1158 = vmatpush.msrb.mxu2 %v1515_v16  ;;  %v2138_v27 = vpop.xlane.xlu0 %680  ;;  %vm814_vm4 = vweird.f32 %v1591_v10 }
 0x61b   :  { %v2140_v40 = vpop.eup %1594  ;;  %v839_v32 = vmul.f32 %v2136_v23, %v2129_v12  ;;  %1596 = vrcp.f32 %v2138_v27  ;;  %vm815_vm6 = vmor %vm813_vm5, %vm814_vm4  ;;  %vm844_vm12 = vweird.f32 %v2136_v23  ;;  %vm848_vm4 = vcmp.eq.f32.partialorder %v847_v4, 8.507059e+37 }
 0x61c   :  { %v810_v28 = vsub.f32 1.0, %v809_v24  ;;  %1159 = vmatpush.msrb.mxu2 %v1516_v26  ;;  %v869_v37 = vmul.f32 %v2140_v40, %v2127_v1  ;;  %1598 = vrcp.f32 %v2147_v54  ;;  %vm874_vm13 = vweird.f32 %v2140_v40  ;;  %vm2172_vm2 = vmor %vm843_vm15, %vm844_vm12 }
 0x61d   :  { %v840_v39 = vsub.f32 1.0, %v839_v32  ;;  %vm2176_vm3 = vmor %vm873_vm1, %vm874_vm13  ;;  %vm878_vm5 = vcmp.eq.f32.partialorder %v877_v8, 8.507059e+37  ;;  %v892_v26 = vand.u32 2147483647, %v2138_v27  ;;  %v930_v8 = vld [vmem:[%s2258_s1 + $0x50] sm:$0xff] }
 0x61e   :  { %v811_v34 = vmul.f32 %v1591_v10, %v810_v28  ;;  %v870_v46 = vsub.f32 1.0, %v869_v37  ;;  %1200 = vmatpush.msrb.mxu3 %v930_v8 }
 0x61f   :  { %v841_v35 = vmul.f32 %v2136_v23, %v840_v39  ;;  %v1524_v12 = vpop.permute.xlu1 %1523  ;;  %vm893_vm9 = vcmp.eq.f32.partialorder %v892_v26, 8.507059e+37 }
 0x620   :  { %v812_v38 = vadd.f32 %v1591_v10, %v811_v34  ;;  %v871_v56 = vmul.f32 %v2140_v40, %v870_v46  ;;  %v1525_v19 = vunpack.i.l.bf16 %v1524_v12  ;;  %v1526_v22 = vunpack.i.h.bf16 %v1524_v12 }
 0x621   :  { %v2150_v29 = vpop.eup %1596 }
 0x622   :  { %v816_v41 = vsel %vm815_vm6, %v1591_v10, %v812_v38  ;;  %v884_v58 = vmul.f32 %v2150_v29, %v2138_v27  ;;  %v872_v62 = vadd.f32 %v2140_v40, %v871_v56  ;;  %v1599_v0 = vpop.eup %1598  ;;  %vm889_vm6 = vweird.f32 %v2150_v29 }
 0x623   :  { %v821_v59 = vsel %vm818_vm7, %v820_v48, %v816_v41  ;;  %v899_v9 = vmul.f32 %v1599_v0, %v2147_v54  ;;  %v894_v10 = vand.u32 2147483648, %v2138_v27  ;;  %vm888_vm7 = vweird.f32 %v2138_v27  ;;  %v928_v48 = vld [vmem:[%s2258_s1 + $0x40] sm:$0xff] }
 0x624   :  { %v822_v49 = vmul.f32 %v2059_v55, %v821_v59  ;;  %v842_v55 = vadd.f32 %v2136_v23, %v841_v35  ;;  %v885_v63 = vsub.f32 1.0, %v884_v58  ;;  %v876_v1 = vsel %vm2176_vm3, %v2140_v40, %v872_v62  ;;  %vm890_vm8 = vmor %vm888_vm7, %vm889_vm6  ;;  %1106 = vmatpush.msra.mxu1 %v928_v48 }
 0x625   :  { %v881_v18 = vsel %vm878_vm5, %v880_v13, %v876_v1  ;;  %v900_v20 = vsub.f32 1.0, %v899_v9  ;;  %v895_v32 = vor.u32 1.1754944e-38, %v894_v10  ;;  %vm904_vm10 = vweird.f32 %v1599_v0 }
 0x626   :  { %1440 = vmatmul.msk.f32.vlgmr.msrb.gmra.mxu2 %vm19_vm0, %v822_v49  ;;  %v846_v33 = vsel %vm2172_vm2, %v2136_v23, %v842_v55  ;;  %v886_v11 = vmul.f32 %v2150_v29, %v885_v63  ;;  %v882_v24 = vmul.f32 %v2057_v14, %v881_v18  ;;  %v907_v27 = vand.u32 2147483647, %v2147_v54  ;;  %vm905_vm12 = vmor %vm903_vm11, %vm904_vm10  ;;  %1298 = vmatpush.msrb.mxu1 %v931_v61 }
 0x627   :  { %v851_v17 = vsel %vm848_vm4, %v850_v50, %v846_v33  ;;  %v901_v40 = vmul.f32 %v1599_v0, %v900_v20 }
 0x628   :  { %v887_v16 = vadd.f32 %v2150_v29, %v886_v11  ;;  %v852_v23 = vmul.f32 %v2035_v31, %v851_v17  ;;  %v909_v31 = vand.u32 2147483648, %v2147_v54  ;;  %vm908_vm13 = vcmp.eq.f32.partialorder %v907_v27, 8.507059e+37 }
 0x629   :  { %v902_v21 = vadd.f32 %v1599_v0, %v901_v40 }
 0x62a   :  { %v891_v28 = vsel %vm890_vm8, %v2150_v29, %v887_v16  ;;  %v910_v30 = vor.u32 1.1754944e-38, %v909_v31 }
 0x62b   :  { %v896_v25 = vsel %vm893_vm9, %v895_v32, %v891_v28  ;;  %v906_v34 = vsel %vm905_vm12, %v1599_v0, %v902_v21 }
 0x62c   :  { %v897_v14 = vmul.f32 %v2065_v57, %v896_v25  ;;  %v911_v37 = vsel %vm908_vm13, %v910_v30, %v906_v34 }
 0x62d   :  { %v1519_v44 = vpop.permute.xlu0 %1518  ;;  %v912_v38 = vmul.f32 %v2050_v47, %v911_v37 }
 0x62e   :  { %v1520_v6 = vunpack.i.l.bf16 %v1519_v44  ;;  %1441 = vmatmul.msk.f32.gmra.mxu2 %vm19_vm0, %v837_v2  ;;  %v1521_v15 = vunpack.i.h.bf16 %v1519_v44 }
 0x630   :  { %1254 = vmatpush.msrb.mxu0 %v1520_v6 }
 0x632   :  { %1255 = vmatpush.msrb.mxu0 %v1521_v15 }
 0x634   :  { %1256 = vmatpush.msrb.mxu0 %v1525_v19 }
 0x636   :  { %1442 = vmatmul.msk.f32.gmra.mxu2 %vm19_vm0, %v852_v23  ;;  %1257 = vmatpush.msrb.mxu0 %v1526_v22 }
 0x637   :  { %1448 = vmatmul.msk.f32.vlgmr.msrb.gmra.mxu0 %vm19_vm0, %v882_v24 }
 0x63f   :  { %1449 = vmatmul.msk.f32.gmra.mxu0 %vm19_vm0, %v897_v14 }
 0x647   :  { %1450 = vmatmul.msk.f32.gmra.mxu0 %vm19_vm0, %v912_v38 }
 0x654   :  { %v675_v39 = vpop.xlane.xlu2 %674 }
 0x655   :  { %1600 = vrcp.f32 %v675_v39  ;;  %v864_v54 = vand.u32 2147483648, %v675_v39  ;;  %v862_v46 = vand.u32 2147483647, %v675_v39  ;;  %vm858_vm1 = vweird.f32 %v675_v39 }
 0x657   :  { %v865_v47 = vor.u32 1.1754944e-38, %v864_v54  ;;  %vm863_vm3 = vcmp.eq.f32.partialorder %v862_v46, 8.507059e+37  ;;  %v1318_v54 = vld [vmem:[%s2258_s1 + $0x70] sm:$0xff] }
 0x658   :  { %v1529_v46 = vld [vmem:[%s2258_s1 + $0xb0] ss:$0 sm:$0xff] }
 0x65b   :  { %v1601_v57 = vpop.eup %1600  ;;  %v1067_v44 = vpop.f32.mrf.mxu0 }
 0x65c   :  { %v854_v41 = vmul.f32 %v1601_v57, %v675_v39  ;;  %vm859_vm15 = vweird.f32 %v1601_v57 }
 0x65d   :  { %vm860_vm2 = vmor %vm858_vm1, %vm859_vm15 }
 0x65e   :  { %v855_v42 = vsub.f32 1.0, %v854_v41  ;;  %v1316_v41 = vld [vmem:[%s2258_s1 + $0x60] sm:$0xff] }
 0x660   :  { %v856_v45 = vmul.f32 %v1601_v57, %v855_v42  ;;  %v1317_v42 = vld [vmem:[%s2258_s1 + $0x68] sm:$0xff] }
 0x662   :  { %v857_v59 = vadd.f32 %v1601_v57, %v856_v45  ;;  %v1319_v45 = vld [vmem:[%s2258_s1 + $0x78] sm:$0xff]  ;;  %s1644_s1 = smov 128  }
 0x663   :  { %v1070_v5 = vpop.f32.mrf.mxu0 }
 0x664   :  { %v861_v29 = vsel %vm860_vm2, %v1601_v57, %v857_v59  ;;  %v687_v49 = vpop.xlane.xlu0 %686 }
 0x665   :  { %v866_v51 = vsel %vm863_vm3, %v865_v47, %v861_v29  ;;  %1602 = vrcp.f32 %v687_v49  ;;  %v924_v58 = vand.u32 2147483648, %v687_v49  ;;  %v922_v55 = vand.u32 2147483647, %v687_v49 }
 0x666   :  { %v867_v35 = vmul.f32 %v2085_v7, %v866_v51  ;;  %vm918_vm5 = vweird.f32 %v687_v49 }
 0x667   :  { %v925_v62 = vor.u32 1.1754944e-38, %v924_v58  ;;  %vm923_vm7 = vcmp.eq.f32.partialorder %v922_v55, 8.507059e+37 }
 0x668   :  { %1443 = vmatmul.msk.f32.gmra.mxu2 %vm19_vm0, %v867_v35 }
 0x66b   :  { %v1603_v53 = vpop.eup %1602  ;;  %v1073_v6 = vpop.f32.mrf.mxu0 }
 0x66c   :  { %v914_v3 = vmul.f32 %v1603_v53, %v687_v49  ;;  %vm919_vm4 = vweird.f32 %v1603_v53 }
 0x66d   :  { %vm920_vm6 = vmor %vm918_vm5, %vm919_vm4 }
 0x66e   :  { %v915_v56 = vsub.f32 1.0, %v914_v3 }
 0x670   :  { %v916_v52 = vmul.f32 %v1603_v53, %v915_v56 }
 0x672   :  { %v917_v60 = vadd.f32 %v1603_v53, %v916_v52 }
 0x673   :  { %v1076_v50 = vpop.f32.mrf.mxu0 }
 0x674   :  { %v973_v63 = vpop.f32.mrf.mxu2  ;;  %v921_v0 = vsel %vm920_vm6, %v1603_v53, %v917_v60 }
 0x675   :  { %1436 = vmatmul.msk.f32.vlgmr.msra.gmra.mxu1 %vm279_vm14, %v973_v63  ;;  %v926_v36 = vsel %vm923_vm7, %v925_v62, %v921_v0 }
 0x676   :  { %v927_v7 = vmul.f32 %v2106_v43, %v926_v36 }
 0x678   :  { %1451 = vmatmul.msk.f32.gmra.mxu0 %vm19_vm0, %v927_v7 }
 0x67c   :  { %v976_v2 = vpop.f32.mrf.mxu2 }
 0x67d   :  { %1437 = vmatmul.msk.f32.gmra.mxu1 %vm279_vm14, %v976_v2 }
 0x684   :  { %v979_v4 = vpop.f32.mrf.mxu2 }
 0x685   :  { %1438 = vmatmul.msk.f32.gmra.mxu1 %vm279_vm14, %v979_v4 }
 0x696   :  { %v982_v43 = vpop.f32.mrf.mxu2 }
 0x697   :  { %1439 = vmatmul.msk.f32.gmra.mxu1 %vm279_vm14, %v982_v43 }
 0x6a9   :  { %v1161_v33 = vpop.f32.mrf.mxu2 }
 0x6aa   :  { %1444 = vmatmul.msk.f32.vlgmr.msrb.gmra.mxu3 %vm279_vm14, %v1161_v33 }
 0x6b1   :  { %v1164_v9 = vpop.f32.mrf.mxu2 }
 0x6b2   :  { %1445 = vmatmul.msk.f32.gmra.mxu3 %vm279_vm14, %v1164_v9 }
 0x6b4   :  { %v1259_v1 = vpop.f32.mrf.mxu0 }
 0x6b5   :  { %1452 = vmatmul.msk.f32.vlgmr.msrb.gmra.mxu1 %vm279_vm14, %v1259_v1 }
 0x6b9   :  { %v1167_v11 = vpop.f32.mrf.mxu2 }
 0x6ba   :  { %1446 = vmatmul.msk.f32.gmra.mxu3 %vm279_vm14, %v1167_v11 }
 0x6bc   :  { %v1262_v12 = vpop.f32.mrf.mxu0 }
 0x6bd   :  { %1453 = vmatmul.msk.f32.gmra.mxu1 %vm279_vm14, %v1262_v12 }
 0x6c4   :  { %v1265_v13 = vpop.f32.mrf.mxu0 }
 0x6c5   :  { %1454 = vmatmul.msk.f32.gmra.mxu1 %vm279_vm14, %v1265_v13 }
 0x6eb   :  { %v1170_v15 = vpop.f32.mrf.mxu2 }
 0x6ec   :  { %1447 = vmatmul.msk.f32.gmra.mxu3 %vm279_vm14, %v1170_v15 }
 0x6f2   :  { %v1108_v18 = vpop.f32.mrf.mxu1 }
 0x6f3   :  { %v1109_v30 = vadd.f32 %v1108_v18, %v1067_v44 }
 0x6f5   :  { %v1268_v17 = vpop.f32.mrf.mxu0 }
 0x6f6   :  { %1455 = vmatmul.msk.f32.gmra.mxu1 %vm279_vm14, %v1268_v17 }
 0x6fa   :  { %v1111_v19 = vpop.f32.mrf.mxu1 }
 0x6fb   :  { %v1112_v14 = vadd.f32 %v1111_v19, %v1070_v5 }
 0x702   :  { %v1114_v20 = vpop.f32.mrf.mxu1 }
 0x703   :  { %v1115_v25 = vadd.f32 %v1114_v20, %v1073_v6 }
 0x714   :  { %v1117_v16 = vpop.f32.mrf.mxu1 }
 0x715   :  { %v1118_v32 = vadd.f32 %v1117_v16, %v1076_v50 }
 0x72d   :  { %v1202_v10 = vpop.f32.mrf.mxu3 }
 0x72e   :  { %v1214_v39 = vadd.f32 %v1202_v10, %v1109_v30 }
 0x732   :  { %v1300_v22 = vpop.f32.mrf.mxu1 }
 0x733   :  { %v1312_v57 = vadd.f32 %v1300_v22, %v1214_v39 }
 0x735   :  { %v1205_v23 = vpop.f32.mrf.mxu3 }
 0x736   :  { %v1215_v37 = vadd.f32 %v1205_v23, %v1112_v14 }
 0x73a   :  { %v1303_v24 = vpop.f32.mrf.mxu1 }
 0x73b   :  { %v1313_v48 = vadd.f32 %v1303_v24, %v1215_v37 }
 0x73d   :  { %v1208_v26 = vpop.f32.mrf.mxu3 }
 0x73e   :  { %v1216_v27 = vadd.f32 %v1208_v26, %v1115_v25 }
 0x742   :  { %v1306_v40 = vpop.f32.mrf.mxu1 }
 0x743   :  { %v1314_v38 = vadd.f32 %v1306_v40, %v1216_v27 }
 0x76f   :  { %v1211_v28 = vpop.f32.mrf.mxu3 }
 0x770   :  { %v1217_v21 = vadd.f32 %v1211_v28, %v1118_v32 }
 0x773   :  { %v1309_v31 = vpop.f32.mrf.mxu1 }
 0x774   :  { %v1315_v34 = vadd.f32 %v1309_v31, %v1217_v21 }
 0x776   :  { %1345 = vmatpush.msra.mxu2 %v1315_v34 }
 0x778   :  { %1346 = vmatpush.msra.mxu2 %v1314_v38 }
 0x77a   :  { %1347 = vmatpush.msra.mxu2 %v1313_v48 }
 0x77c   :  { %1348 = vmatpush.msra.mxu2 %v1312_v57 }
 0x77d   :  { %1456 = vmatmul.msk.f32.vlgmr.msra.gmra.mxu2 %vm19_vm0, %v1316_v41 }
 0x785   :  { %1457 = vmatmul.msk.f32.gmra.mxu2 %vm19_vm0, %v1317_v42 }
 0x78d   :  { %1458 = vmatmul.msk.f32.gmra.mxu2 %vm19_vm0, %v1318_v54 }
 0x795   :  { %1459 = vmatmul.msk.f32.gmra.mxu2 %vm19_vm0, %v1319_v45 }
 0x800   :  { %v1350_v59 = vpop.f32.mrf.mxu2 }
 0x801   :  { %v1351_v47 = vadd.f32 %v1529_v46, %v1350_v59 }
 0x803   :  { %1362 = vst.msk [vmem:[#allocation2] sm:$0xff] %vm19_vm0, %v1351_v47 }
 0x808   :  { %v1353_v29 = vpop.f32.mrf.mxu2 }
 0x809   :  { %v1354_v49 = vadd.f32 %v1529_v46, %v1353_v29 }
 0x80b   :  { %1363 = vst.msk [vmem:[#allocation2 + $0x8] sm:$0xff] %vm19_vm0, %v1354_v49 }
 0x810   :  { %v1356_v51 = vpop.f32.mrf.mxu2 }
 0x811   :  { %v1357_v35 = vadd.f32 %v1529_v46, %v1356_v51 }
 0x813   :  { %1364 = vst.msk [vmem:[#allocation2 + $0x10] sm:$0xff] %vm19_vm0, %v1357_v35 }
 0x818   :  { %v1359_v53 = vpop.f32.mrf.mxu2 }
 0x819   :  { %v1360_v3 = vadd.f32 %v1529_v46, %v1359_v53 }
 0x81b   :  { %1365 = vst.msk [vmem:[#allocation2 + $0x18] sm:$0xff] %vm19_vm0, %v1360_v3 }
 0x81c   :  { %1378 = dma.vmem_to_hbm [thread:$0]  %s1371_s19, 512, %s1373_s22, [#allocation3], %s1644_s1, %s1644_s1, %s1645_s23  }
 0x81d   :  { %1628 = dma.done.wait [#allocation3], 512  }
 0x81e   :  { %1629 = vsyncadd [#allocation3], 4294966784 }
 0x81f   :  { %1383 = vsyncpa [#allocation3], 1 }

</bundles_post_ra>
